<compile_context>
chip_gen: v6e
topology: v6e:2x2x1
jax: 0.10.0
libtpu: 0.0.40
codegen_flags: <defaults>
</compile_context>

<pallas_src>
import functools

import numpy as np
import jax
import jax.numpy as jnp
from jax.experimental import pallas as pl
from jax.experimental.pallas import tpu as pltpu

NEURONS_1 = 32
NEURONS_2 = 32
NUM_CLUSTER = 4
NEG_SLOPE = 0.45
SUBLANE_PACK = 8      # node sub-blocks stacked on sublanes (K=M=256 contraction on the MXU)
NEG_BIG = -1e30       # finite "-inf" (avoids inf-inf -> NaN in the running max/combine)


# -----------------------------------------------------------------------------
# Host-side glue: unpooling_featurizer with cluster_method='random'
# -----------------------------------------------------------------------------
def unpooling_featurizer_random(x, cls, batch):
    # TODO(synk): data-dependent per-graph loop with np.random.choice stays on host
    # (cluster_method='learnable' would additionally need the learn_unpool Linear).
    x = np.asarray(x)
    cls = np.asarray(cls).reshape(-1)
    batch = np.asarray(batch).reshape(-1)
    _, g_counts = np.unique(batch, return_counts=True)
    new_rows = []
    start = 0
    for n in g_counts:
        gf = x[start:start + n]
        ct = cls[start:start + n]
        start += n
        n_rows = int(ct.max()) + 1
        cluster_sum = np.zeros((n_rows, gf.shape[1]), dtype=np.float32)
        np.add.at(cluster_sum, ct, gf)
        if n == 1:
            new_rows.append(cluster_sum)
        elif n == 2:
            new_rows.append(cluster_sum)
            new_rows.append(cluster_sum)
        else:
            region_arr = ct
            random_sets = [np.random.choice(np.setdiff1d(region_arr, e)) for e in region_arr]
            unique, counts = np.unique(region_arr, return_counts=True)
            counts = counts / counts.sum()
            sets_dict = dict(zip(unique, counts))
            random_ratio = np.array([sets_dict[i] for i in random_sets], dtype=np.float64)
            random_ratio = (random_ratio / random_ratio.sum()).reshape(-1, 1)
            cs = cluster_sum[random_sets] * random_ratio
            new_rows.append(cs.astype(np.float32))
    return np.concatenate(new_rows, axis=0).astype(np.float32)


# -----------------------------------------------------------------------------
# Host-side packing (numpy) -> the arrays arrive on device already in kernel layout.
# -----------------------------------------------------------------------------
def pack_graph_inputs(rx, batch, *, pack=SUBLANE_PACK, tile_l=128):
    """Node n lives at (band p, lane j) with p = n // m_pad, j = n % m_pad.

      rx_p    : [pack*n1, m_pad]  bf16 ; band p rows [p*n1:(p+1)*n1] hold its nodes' features
      batch_p : [pack,    m_pad]  int32 graph ids, -1 on padded slots
    """
    rx = np.asarray(rx, dtype=np.float32)
    batch = np.asarray(batch).astype(np.int32).reshape(-1)
    n, n1 = rx.shape
    m_pad = ((max(1, -(-n // pack)) + tile_l - 1) // tile_l) * tile_l
    n_pad = pack * m_pad
    rx_pad = np.zeros((n_pad, n1), np.float32)
    rx_pad[:n] = rx
    b_pad = np.full((n_pad,), -1, np.int32)
    b_pad[:n] = batch
    rx_p = rx_pad.reshape(pack, m_pad, n1).transpose(0, 2, 1).reshape(pack * n1, m_pad)
    rx_p = np.ascontiguousarray(rx_p).astype(jnp.bfloat16)   # bf16 in HBM (half the DMA)
    batch_p = b_pad.reshape(pack, m_pad)
    return jnp.asarray(rx_p), jnp.asarray(batch_p)


def pack_params(w1, b1, w2, b2, *, pack=SUBLANE_PACK):
    """Block-diagonal replication of the tiny Linear weights (built once, host-side)."""
    w1 = np.asarray(w1, np.float32)            # [n1, n2]
    b1 = np.asarray(b1, np.float32)            # [n2]
    w2 = np.asarray(w2, np.float32)            # [n2, 1]
    b2 = np.asarray(b2, np.float32)            # [1]
    n1, n2 = w1.shape
    eye = np.eye(pack, dtype=np.float32)
    w1_blk = np.kron(eye, w1.T)                # [pack*n2, pack*n1] block-diagonal
    b1_p = np.tile(b1, pack).reshape(pack * n2, 1)
    w2sel = np.kron(eye, w2.reshape(1, n2))    # [pack, pack*n2] per-band reducer
    b2_s = b2.reshape(1, 1)
    return (jnp.asarray(w1_blk), jnp.asarray(b1_p),
            jnp.asarray(w2sel), jnp.asarray(b2_s))


# -----------------------------------------------------------------------------
# Kernel 1: layer_1 -> leaky_relu(0.45) -> atten_layer scores + per-tile softmax partials
# -----------------------------------------------------------------------------
def _score_stats_kernel(batch_ref, rx_ref, w1_ref, b1_ref, w2_ref, b2_ref,
                        s_ref, m_ref, l_ref, *, g_pad):
    # bf16 is upcast in-kernel (free VPU work under the DMA) -> portable f32 x f32 dots.
    x = rx_ref[...].astype(jnp.float32)                               # [P*n1, L]
    h = jnp.dot(w1_ref[...], x, preferred_element_type=jnp.float32) + b1_ref[...]
    h = jnp.where(h >= 0.0, h, NEG_SLOPE * h)                         # leaky_relu(0.45)
    # atten_layer as a second small matmul that also folds the per-band feature reduce.
    s = jnp.dot(w2_ref[...], h, preferred_element_type=jnp.float32) + b2_ref[0, 0]  # [P, L]
    s_ref[...] = s

    # Per-tile per-graph (max, sum-exp) partials; combined across tiles outside.
    b = batch_ref[...]                                                # [P, L] int32 (-1 = pad)
    p_, l_ = s.shape
    gid = jax.lax.broadcasted_iota(jnp.int32, (g_pad, p_, l_), 0)
    mask = gid == b[None, :, :]                                       # [G, P, L]
    masked = jnp.where(mask, s[None, :, :], NEG_BIG)
    t_max = jnp.max(jnp.max(masked, axis=2, keepdims=True),
                    axis=1, keepdims=True)                            # [G, 1, 1]
    node_max = jnp.sum(jnp.where(mask, t_max, 0.0), axis=0)           # [P, L] (0 on pads)
    e = jnp.exp(s - node_max)                                         # finite everywhere
    t_sum = jnp.sum(jnp.sum(jnp.where(mask, e[None, :, :], 0.0), axis=2, keepdims=True),
                    axis=1, keepdims=True)                            # [G, 1, 1]
    m_ref[...] = t_max.reshape(g_pad, 1)
    l_ref[...] = t_sum.reshape(g_pad, 1)


# -----------------------------------------------------------------------------
# Kernel 2: per-node normalization with the combined per-graph stats (fully parallel)
# -----------------------------------------------------------------------------
def _normalize_kernel(batch_ref, s_ref, m_ref, il_ref, out_ref, *, g_pad):
    s = s_ref[...]                                                    # [P, L]
    b = batch_ref[...]
    p_, l_ = s.shape
    gid = jax.lax.broadcasted_iota(jnp.int32, (g_pad, p_, l_), 0)
    mask = gid == b[None, :, :]
    node_m = jnp.sum(jnp.where(mask, m_ref[...].reshape(g_pad, 1, 1), 0.0), axis=0)
    node_il = jnp.sum(jnp.where(mask, il_ref[...].reshape(g_pad, 1, 1), 0.0), axis=0)
    # padded slots: node_il == 0 -> weight 0; no division anywhere in the kernel.
    out_ref[...] = jnp.exp(s - node_m) * node_il


# -----------------------------------------------------------------------------
# Device wrapper
# -----------------------------------------------------------------------------
@functools.partial(jax.jit, static_argnames=("num_graphs", "tile_l"))
def _cluster_attention_device(rx_p, batch_p, w1_blk, b1_p, w2sel, b2_s,
                              *, num_graphs, tile_l):
    pn1, m_pad = rx_p.shape
    pn2 = w1_blk.shape[0]
    pack = batch_p.shape[0]
    n_tiles = m_pad // tile_l                      # pack * tile_l nodes per grid step
    g_pad = ((num_graphs + 7) // 8) * 8

    # ---- Pass 1: scores + per-tile partial stats (tiles fully independent) ----------
    s_pack, m_part, l_part = pl.pallas_call(
        functools.partial(_score_stats_kernel, g_pad=g_pad),
        out_shape=(
            jax.ShapeDtypeStruct((pack, m_pad), jnp.float32),
            jax.ShapeDtypeStruct((n_tiles, g_pad, 1), jnp.float32),
            jax.ShapeDtypeStruct((n_tiles, g_pad, 1), jnp.float32),
        ),
        grid_spec=pl.GridSpec(
            grid=(n_tiles,),
            in_specs=[
                pl.BlockSpec((pack, tile_l), lambda i: (0, i)),        # batch ids (tiled)
                pl.BlockSpec((pn1, tile_l), lambda i: (0, i)),         # packed rx tile (bf16)
                pl.BlockSpec((pn2, pn1), lambda i: (0, 0)),            # block-diag W1 (resident)
                pl.BlockSpec((pn2, 1), lambda i: (0, 0)),              # b1 column
                pl.BlockSpec((pack, pn2), lambda i: (0, 0)),           # W2 band-selector
                pl.BlockSpec(memory_space=pltpu.MemorySpace.SMEM),     # b2 scalar
            ],
            out_specs=(
                pl.BlockSpec((pack, tile_l), lambda i: (0, i)),        # lane-dense scores
                pl.BlockSpec((None, g_pad, 1), lambda i: (i, 0, 0)),   # per-tile max
                pl.BlockSpec((None, g_pad, 1), lambda i: (i, 0, 0)),   # per-tile sum-exp
            ),
        ),
        compiler_params=pltpu.CompilerParams(dimension_semantics=("parallel",)),
    )(batch_p, rx_p, w1_blk, b1_p, w2sel, b2_s)

    # ---- Tiny O(n_tiles * G) cross-tile combine of the partial stats -----------------
    m_part = m_part[:, :, 0]
    l_part = l_part[:, :, 0]
    m_g = jnp.max(m_part, axis=0)                                      # [G]
    l_g = jnp.sum(l_part * jnp.exp(m_part - m_g[None, :]), axis=0)     # [G]
    inv_l = 1.0 / (l_g + 1e-16)                                        # softmax eps (torch_geometric)
    m_col = m_g.reshape(g_pad, 1)
    il_col = inv_l.reshape(g_pad, 1)

    # ---- Pass 2: normalize (fully parallel over tiles) --------------------------------
    w_pack = pl.pallas_call(
        functools.partial(_normalize_kernel, g_pad=g_pad),
        out_shape=jax.ShapeDtypeStruct((pack, m_pad), jnp.float32),
        grid_spec=pl.GridSpec(
            grid=(n_tiles,),
            in_specs=[
                pl.BlockSpec((pack, tile_l), lambda i: (0, i)),        # batch ids
                pl.BlockSpec((pack, tile_l), lambda i: (0, i)),        # scores
                pl.BlockSpec((g_pad, 1), lambda i: (0, 0)),            # per-graph max
                pl.BlockSpec((g_pad, 1), lambda i: (0, 0)),            # per-graph 1/sum
            ],
            out_specs=pl.BlockSpec((pack, tile_l), lambda i: (0, i)),
        ),
        compiler_params=pltpu.CompilerParams(dimension_semantics=("parallel",)),
    )(batch_p, s_pack, m_col, il_col)
    return w_pack


def cluster_attention_forward(rx, batch, w1, b1, w2, b2, *, num_graphs, tile_l=128):
    """layer_1 -> leaky_relu(0.45) -> atten_layer -> per-graph softmax. Returns [N, 1]."""
    n = np.asarray(rx).shape[0]
    rx_p, batch_p = pack_graph_inputs(rx, batch, tile_l=tile_l)
    w1_blk, b1_p, w2sel, b2_s = pack_params(w1, b1, w2, b2)
    w_pack = _cluster_attention_device(rx_p, batch_p, w1_blk, b1_p, w2sel, b2_s,
                                       num_graphs=num_graphs, tile_l=tile_l)
    # packed layout [pack, m_pad] flattens row-major back to node order
    return w_pack.reshape(-1)[:n].reshape(n, 1)


# -----------------------------------------------------------------------------
if __name__ == "__main__":
    key = jax.random.PRNGKey(0)
    k1, k2, k3, k4, kx = jax.random.split(key, 5)

    # 3 graphs with 4, 3, 5 nodes -> N = 12 nodes total
    g_sizes = [4, 3, 5]
    N = sum(g_sizes)
    G = len(g_sizes)
    batch = np.concatenate([np.full(n, g, dtype=np.int64) for g, n in enumerate(g_sizes)])
    cls = np.array([0, 1, 2, 1,
                    0, 1, 0,
                    0, 1, 2, 3, 2], dtype=np.int64)
    x = np.asarray(jax.random.normal(kx, (N, NEURONS_1), dtype=jnp.float32))

    # Deterministic Linear params (PyTorch-style uniform(+-1/sqrt(fan_in))),
    # weights pre-transposed to [in, out].
    lim1 = 1.0 / np.sqrt(NEURONS_1)
    W1 = jax.random.uniform(k1, (NEURONS_1, NEURONS_2), jnp.float32, -lim1, lim1)  # layer_1
    b1 = jax.random.uniform(k2, (NEURONS_2,), jnp.float32, -lim1, lim1)
    lim2 = 1.0 / np.sqrt(NEURONS_2)
    W2 = jax.random.uniform(k3, (NEURONS_2, 1), jnp.float32, -lim2, lim2)          # atten_layer
    b2 = jax.random.uniform(k4, (1,), jnp.float32, -lim2, lim2)
    # learn_unpool (Linear(2*n1+3, num_cluster)) is only used for cluster_method
    # 'learnable'; this script exercises the default 'random' method.

    np.random.seed(0)  # module seeds numpy in eval mode
    rx = unpooling_featurizer_random(x, cls, batch)                    # [N, NEURONS_1]

    out = cluster_attention_forward(rx, batch, W1, b1, W2, b2, num_graphs=G, tile_l=128)
    out = np.asarray(jax.block_until_ready(out))                       # [N, 1]

    # Reference (rx rounded to bf16 exactly as it is stored for the kernel; f32 elsewhere).
    rx_b = np.asarray(rx).astype(jnp.bfloat16).astype(np.float32)
    W1_np, b1_np = np.asarray(W1), np.asarray(b1)
    W2_np, b2_np = np.asarray(W2), np.asarray(b2)
    h_ref = rx_b @ W1_np + b1_np[None, :]
    h_ref = np.where(h_ref >= 0.0, h_ref, NEG_SLOPE * h_ref)
    s_ref = h_ref @ W2_np + b2_np[None, :]
    ref = np.zeros_like(s_ref)
    for g in range(G):
        idx = batch == g
        e = np.exp(s_ref[idx] - s_ref[idx].max())
        ref[idx] = e / (e.sum() + 1e-16)

    assert np.allclose(out, ref, rtol=2e-4, atol=1e-5), np.abs(out - ref).max()
    # sanity: softmax weights sum to ~1 per graph
    seg = (np.arange(G)[:, None] == batch[None, :]).astype(np.float32)
    assert np.allclose(seg @ out, 1.0, atol=1e-4), seg @ out
    print("KERNEL_OK")
</pallas_src>

<mosaic_0001>
module attributes {stable_mosaic.version = 11 : i64} {
  func.func @_score_stats_kernel(%arg0: i32, %arg1: memref<8x128xi32, #tpu.memory_space<vmem>>, %arg2: memref<256x128xbf16, #tpu.memory_space<vmem>>, %arg3: memref<256x256xf32, #tpu.memory_space<vmem>>, %arg4: memref<256x1xf32, #tpu.memory_space<vmem>>, %arg5: memref<8x256xf32, #tpu.memory_space<vmem>>, %arg6: memref<1x1xf32, #tpu.memory_space<smem>>, %arg7: memref<8x128xf32, #tpu.memory_space<vmem>>, %arg8: memref<1x8x1xf32, #tpu.memory_space<vmem>>, %arg9: memref<1x8x1xf32, #tpu.memory_space<vmem>>) attributes {dimension_semantics = [#tpu.dimension_semantics<parallel>], iteration_bounds = array<i64: 1>, scalar_prefetch = 0 : i64, scratch_operands = 0 : i64, tpu.core_type = #tpu.core_type<tc>, window_params = [{transform_indices = @transform_0, window_bounds = array<i64: 8, 128>}, {transform_indices = @transform_1, window_bounds = array<i64: 256, 128>}, {pipeline_mode = #tpu.pipeline_mode<synchronous>, transform_indices = @transform_2, window_bounds = array<i64: 256, 256>}, {pipeline_mode = #tpu.pipeline_mode<synchronous>, transform_indices = @transform_3, window_bounds = array<i64: 256, 1>}, {pipeline_mode = #tpu.pipeline_mode<synchronous>, transform_indices = @transform_4, window_bounds = array<i64: 8, 256>}, {transform_indices = @transform_5, window_bounds = array<i64: 1, 1>}, {transform_indices = @transform_6, window_bounds = array<i64: 8, 128>}, {transform_indices = @transform_7, window_bounds = array<i64: 1, 8, 1>}, {transform_indices = @transform_8, window_bounds = array<i64: 1, 8, 1>}]} {
    %c0 = arith.constant 0 : index
    %c0_0 = arith.constant 0 : index
    %0 = vector.load %arg2[%c0, %c0_0] : memref<256x128xbf16, #tpu.memory_space<vmem>>, vector<256x128xbf16>
    %1 = arith.extf %0 : vector<256x128xbf16> to vector<256x128xf32>
    %c0_1 = arith.constant 0 : index
    %c0_2 = arith.constant 0 : index
    %2 = vector.load %arg3[%c0_1, %c0_2] : memref<256x256xf32, #tpu.memory_space<vmem>>, vector<256x256xf32>
    %cst = arith.constant dense<0.000000e+00> : vector<256x128xf32>
    %3 = tpu.matmul %2, %1, %cst {dimension_numbers = #tpu.dot_dimension_numbers<[1], [0], [0], [1], [0, 0, 1, 1], [], []>} : vector<256x256xf32>, vector<256x128xf32>, vector<256x128xf32> -> vector<256x128xf32>
    %c0_3 = arith.constant 0 : index
    %c0_4 = arith.constant 0 : index
    %4 = vector.load %arg4[%c0_3, %c0_4] : memref<256x1xf32, #tpu.memory_space<vmem>>, vector<256x1xf32>
    %5 = vector.broadcast %4 : vector<256x1xf32> to vector<256x128xf32>
    %6 = arith.addf %3, %5 : vector<256x128xf32>
    %cst_5 = arith.constant 0.000000e+00 : f32
    %7 = vector.broadcast %cst_5 : f32 to vector<256x128xf32>
    %8 = arith.cmpf oge, %6, %7 : vector<256x128xf32>
    %cst_6 = arith.constant 4.500000e-01 : f32
    %9 = vector.broadcast %cst_6 : f32 to vector<256x128xf32>
    %10 = arith.mulf %9, %6 : vector<256x128xf32>
    %11 = arith.select %8, %6, %10 : vector<256x128xi1>, vector<256x128xf32>
    %c0_7 = arith.constant 0 : index
    %c0_8 = arith.constant 0 : index
    %12 = vector.load %arg5[%c0_7, %c0_8] : memref<8x256xf32, #tpu.memory_space<vmem>>, vector<8x256xf32>
    %cst_9 = arith.constant dense<0.000000e+00> : vector<8x128xf32>
    %13 = tpu.matmul %12, %11, %cst_9 {dimension_numbers = #tpu.dot_dimension_numbers<[1], [0], [0], [1], [0, 0, 1, 1], [], []>} : vector<8x256xf32>, vector<256x128xf32>, vector<8x128xf32> -> vector<8x128xf32>
    %c0_10 = arith.constant 0 : index
    %c0_11 = arith.constant 0 : index
    %14 = memref.load %arg6[%c0_10, %c0_11] : memref<1x1xf32, #tpu.memory_space<smem>>
    %15 = vector.broadcast %14 : f32 to vector<8x128xf32>
    %16 = arith.addf %13, %15 : vector<8x128xf32>
    %c0_12 = arith.constant 0 : index
    %c0_13 = arith.constant 0 : index
    %17 = vector.load %arg7[%c0_12, %c0_13] : memref<8x128xf32, #tpu.memory_space<vmem>>, vector<8x128xf32>
    tpu.vector_store %arg7[%c0_12, %c0_13], %16 {strides = array<i32>} : memref<8x128xf32, #tpu.memory_space<vmem>>, vector<8x128xf32>,
    %c0_14 = arith.constant 0 : index
    %c0_15 = arith.constant 0 : index
    %18 = vector.load %arg1[%c0_14, %c0_15] : memref<8x128xi32, #tpu.memory_space<vmem>>, vector<8x128xi32>
    %19 = tpu.iota {dimensions = array<i32: 0>} : vector<8x8x128xi32>
    %20 = vector.shape_cast %18 : vector<8x128xi32> to vector<1x8x128xi32>
    %21 = vector.broadcast %20 : vector<1x8x128xi32> to vector<8x8x128xi32>
    %22 = arith.cmpi eq, %19, %21 : vector<8x8x128xi32>
    %23 = vector.shape_cast %16 : vector<8x128xf32> to vector<1x8x128xf32>
    %cst_16 = arith.constant -1.000000e+30 : f32
    %24 = vector.shape_cast %23 : vector<1x8x128xf32> to vector<1x8x128xf32>
    %25 = vector.broadcast %24 : vector<1x8x128xf32> to vector<8x8x128xf32>
    %26 = vector.broadcast %cst_16 : f32 to vector<8x8x128xf32>
    %27 = arith.select %22, %25, %26 : vector<8x8x128xi1>, vector<8x8x128xf32>
    %cst_17 = arith.constant dense<0xFF800000> : vector<8x8xf32>
    %28 = vector.multi_reduction <maximumf>, %27, %cst_17 [2] : vector<8x8x128xf32> to vector<8x8xf32>
    %29 = vector.shape_cast %28 : vector<8x8xf32> to vector<8x8x1xf32>
    %cst_18 = arith.constant dense<0xFF800000> : vector<8x1xf32>
    %30 = vector.multi_reduction <maximumf>, %29, %cst_18 [1] : vector<8x8x1xf32> to vector<8x1xf32>
    %31 = vector.shape_cast %30 : vector<8x1xf32> to vector<8x1x1xf32>
    %cst_19 = arith.constant 0.000000e+00 : f32
    %32 = vector.shape_cast %31 : vector<8x1x1xf32> to vector<8x1x1xf32>
    %33 = vector.broadcast %32 : vector<8x1x1xf32> to vector<8x8x128xf32>
    %34 = vector.broadcast %cst_19 : f32 to vector<8x8x128xf32>
    %35 = arith.select %22, %33, %34 : vector<8x8x128xi1>, vector<8x8x128xf32>
    %cst_20 = arith.constant dense<0.000000e+00> : vector<8x128xf32>
    %36 = vector.multi_reduction <add>, %35, %cst_20 [0] : vector<8x8x128xf32> to vector<8x128xf32>
    %37 = arith.subf %16, %36 : vector<8x128xf32>
    %38 = math.exp %37 : vector<8x128xf32>
    %39 = vector.shape_cast %38 : vector<8x128xf32> to vector<1x8x128xf32>
    %cst_21 = arith.constant 0.000000e+00 : f32
    %40 = vector.shape_cast %39 : vector<1x8x128xf32> to vector<1x8x128xf32>
    %41 = vector.broadcast %40 : vector<1x8x128xf32> to vector<8x8x128xf32>
    %42 = vector.broadcast %cst_21 : f32 to vector<8x8x128xf32>
    %43 = arith.select %22, %41, %42 : vector<8x8x128xi1>, vector<8x8x128xf32>
    %cst_22 = arith.constant dense<0.000000e+00> : vector<8x8xf32>
    %44 = vector.multi_reduction <add>, %43, %cst_22 [2] : vector<8x8x128xf32> to vector<8x8xf32>
    %45 = vector.shape_cast %44 : vector<8x8xf32> to vector<8x8x1xf32>
    %cst_23 = arith.constant dense<0.000000e+00> : vector<8x1xf32>
    %46 = vector.multi_reduction <add>, %45, %cst_23 [1] : vector<8x8x1xf32> to vector<8x1xf32>
    %47 = vector.shape_cast %46 : vector<8x1xf32> to vector<8x1x1xf32>
    %48 = vector.shape_cast %31 : vector<8x1x1xf32> to vector<8x1xf32>
    %c0_24 = arith.constant 0 : index
    %c0_25 = arith.constant 0 : index
    %c0_26 = arith.constant 0 : index
    %49 = vector.load %arg8[%c0_24, %c0_25, %c0_26] : memref<1x8x1xf32, #tpu.memory_space<vmem>>, vector<1x8x1xf32>
    %50 = vector.shape_cast %49 : vector<1x8x1xf32> to vector<8x1xf32>
    %51 = vector.shape_cast %48 : vector<8x1xf32> to vector<1x8x1xf32>
    tpu.vector_store %arg8[%c0_24, %c0_25, %c0_26], %51 {strides = array<i32>} : memref<1x8x1xf32, #tpu.memory_space<vmem>>, vector<1x8x1xf32>,
    %52 = vector.shape_cast %47 : vector<8x1x1xf32> to vector<8x1xf32>
    %c0_27 = arith.constant 0 : index
    %c0_28 = arith.constant 0 : index
    %c0_29 = arith.constant 0 : index
    %53 = vector.load %arg9[%c0_27, %c0_28, %c0_29] : memref<1x8x1xf32, #tpu.memory_space<vmem>>, vector<1x8x1xf32>
    %54 = vector.shape_cast %53 : vector<1x8x1xf32> to vector<8x1xf32>
    %55 = vector.shape_cast %52 : vector<8x1xf32> to vector<1x8x1xf32>
    tpu.vector_store %arg9[%c0_27, %c0_28, %c0_29], %55 {strides = array<i32>} : memref<1x8x1xf32, #tpu.memory_space<vmem>>, vector<1x8x1xf32>,
    return
  }
  func.func @transform_0(%arg0: i32) -> (i32, i32) {
    %c0_i32 = arith.constant 0 : i32
    %c0_i32_0 = arith.constant 0 : i32
    return %c0_i32, %arg0 : i32, i32
  }
  func.func @transform_1(%arg0: i32) -> (i32, i32) {
    %c0_i32 = arith.constant 0 : i32
    %c0_i32_0 = arith.constant 0 : i32
    return %c0_i32, %arg0 : i32, i32
  }
  func.func @transform_2(%arg0: i32) -> (i32, i32) {
    %c0_i32 = arith.constant 0 : i32
    %c0_i32_0 = arith.constant 0 : i32
    %c0_i32_1 = arith.constant 0 : i32
    return %c0_i32, %c0_i32_0 : i32, i32
  }
  func.func @transform_3(%arg0: i32) -> (i32, i32) {
    %c0_i32 = arith.constant 0 : i32
    %c0_i32_0 = arith.constant 0 : i32
    %c0_i32_1 = arith.constant 0 : i32
    return %c0_i32, %c0_i32_0 : i32, i32
  }
  func.func @transform_4(%arg0: i32) -> (i32, i32) {
    %c0_i32 = arith.constant 0 : i32
    %c0_i32_0 = arith.constant 0 : i32
    %c0_i32_1 = arith.constant 0 : i32
    return %c0_i32, %c0_i32_0 : i32, i32
  }
  func.func @transform_5(%arg0: i32) -> (i32, i32) {
    %c0_i32 = arith.constant 0 : i32
    %c0_i32_0 = arith.constant 0 : i32
    %c0_i32_1 = arith.constant 0 : i32
    return %c0_i32, %c0_i32_0 : i32, i32
  }
  func.func @transform_6(%arg0: i32) -> (i32, i32) {
    %c0_i32 = arith.constant 0 : i32
    %c0_i32_0 = arith.constant 0 : i32
    return %c0_i32, %arg0 : i32, i32
  }
  func.func @transform_7(%arg0: i32) -> (i32, i32, i32) {
    %c0_i32 = arith.constant 0 : i32
    %c0_i32_0 = arith.constant 0 : i32
    %c0_i32_1 = arith.constant 0 : i32
    return %arg0, %c0_i32, %c0_i32_0 : i32, i32, i32
  }
  func.func @transform_8(%arg0: i32) -> (i32, i32, i32) {
    %c0_i32 = arith.constant 0 : i32
    %c0_i32_0 = arith.constant 0 : i32
    %c0_i32_1 = arith.constant 0 : i32
    return %arg0, %c0_i32, %c0_i32_0 : i32, i32, i32
  }
}

module attributes {stable_mosaic.version = 11 : i64} {
  func.func @_normalize_kernel(%arg0: i32, %arg1: memref<8x128xi32, #tpu.memory_space<vmem>>, %arg2: memref<8x128xf32, #tpu.memory_space<vmem>>, %arg3: memref<8x1xf32, #tpu.memory_space<vmem>>, %arg4: memref<8x1xf32, #tpu.memory_space<vmem>>, %arg5: memref<8x128xf32, #tpu.memory_space<vmem>>) attributes {dimension_semantics = [#tpu.dimension_semantics<parallel>], iteration_bounds = array<i64: 1>, scalar_prefetch = 0 : i64, scratch_operands = 0 : i64, tpu.core_type = #tpu.core_type<tc>, window_params = [{transform_indices = @transform_0, window_bounds = array<i64: 8, 128>}, {transform_indices = @transform_1, window_bounds = array<i64: 8, 128>}, {pipeline_mode = #tpu.pipeline_mode<synchronous>, transform_indices = @transform_2, window_bounds = array<i64: 8, 1>}, {pipeline_mode = #tpu.pipeline_mode<synchronous>, transform_indices = @transform_3, window_bounds = array<i64: 8, 1>}, {transform_indices = @transform_4, window_bounds = array<i64: 8, 128>}]} {
    %c0 = arith.constant 0 : index
    %c0_0 = arith.constant 0 : index
    %0 = vector.load %arg2[%c0, %c0_0] : memref<8x128xf32, #tpu.memory_space<vmem>>, vector<8x128xf32>
    %c0_1 = arith.constant 0 : index
    %c0_2 = arith.constant 0 : index
    %1 = vector.load %arg1[%c0_1, %c0_2] : memref<8x128xi32, #tpu.memory_space<vmem>>, vector<8x128xi32>
    %2 = tpu.iota {dimensions = array<i32: 0>} : vector<8x8x128xi32>
    %3 = vector.shape_cast %1 : vector<8x128xi32> to vector<1x8x128xi32>
    %4 = vector.broadcast %3 : vector<1x8x128xi32> to vector<8x8x128xi32>
    %5 = arith.cmpi eq, %2, %4 : vector<8x8x128xi32>
    %c0_3 = arith.constant 0 : index
    %c0_4 = arith.constant 0 : index
    %6 = vector.load %arg3[%c0_3, %c0_4] : memref<8x1xf32, #tpu.memory_space<vmem>>, vector<8x1xf32>
    %7 = vector.shape_cast %6 : vector<8x1xf32> to vector<8x1x1xf32>
    %cst = arith.constant 0.000000e+00 : f32
    %8 = vector.shape_cast %7 : vector<8x1x1xf32> to vector<8x1x1xf32>
    %9 = vector.broadcast %8 : vector<8x1x1xf32> to vector<8x8x128xf32>
    %10 = vector.broadcast %cst : f32 to vector<8x8x128xf32>
    %11 = arith.select %5, %9, %10 : vector<8x8x128xi1>, vector<8x8x128xf32>
    %cst_5 = arith.constant dense<0.000000e+00> : vector<8x128xf32>
    %12 = vector.multi_reduction <add>, %11, %cst_5 [0] : vector<8x8x128xf32> to vector<8x128xf32>
    %c0_6 = arith.constant 0 : index
    %c0_7 = arith.constant 0 : index
    %13 = vector.load %arg4[%c0_6, %c0_7] : memref<8x1xf32, #tpu.memory_space<vmem>>, vector<8x1xf32>
    %14 = vector.shape_cast %13 : vector<8x1xf32> to vector<8x1x1xf32>
    %cst_8 = arith.constant 0.000000e+00 : f32
    %15 = vector.shape_cast %14 : vector<8x1x1xf32> to vector<8x1x1xf32>
    %16 = vector.broadcast %15 : vector<8x1x1xf32> to vector<8x8x128xf32>
    %17 = vector.broadcast %cst_8 : f32 to vector<8x8x128xf32>
    %18 = arith.select %5, %16, %17 : vector<8x8x128xi1>, vector<8x8x128xf32>
    %cst_9 = arith.constant dense<0.000000e+00> : vector<8x128xf32>
    %19 = vector.multi_reduction <add>, %18, %cst_9 [0] : vector<8x8x128xf32> to vector<8x128xf32>
    %20 = arith.subf %0, %12 : vector<8x128xf32>
    %21 = math.exp %20 : vector<8x128xf32>
    %22 = arith.mulf %21, %19 : vector<8x128xf32>
    %c0_10 = arith.constant 0 : index
    %c0_11 = arith.constant 0 : index
    %23 = vector.load %arg5[%c0_10, %c0_11] : memref<8x128xf32, #tpu.memory_space<vmem>>, vector<8x128xf32>
    tpu.vector_store %arg5[%c0_10, %c0_11], %22 {strides = array<i32>} : memref<8x128xf32, #tpu.memory_space<vmem>>, vector<8x128xf32>,
    return
  }
  func.func @transform_0(%arg0: i32) -> (i32, i32) {
    %c0_i32 = arith.constant 0 : i32
    %c0_i32_0 = arith.constant 0 : i32
    return %c0_i32, %arg0 : i32, i32
  }
  func.func @transform_1(%arg0: i32) -> (i32, i32) {
    %c0_i32 = arith.constant 0 : i32
    %c0_i32_0 = arith.constant 0 : i32
    return %c0_i32, %arg0 : i32, i32
  }
  func.func @transform_2(%arg0: i32) -> (i32, i32) {
    %c0_i32 = arith.constant 0 : i32
    %c0_i32_0 = arith.constant 0 : i32
    %c0_i32_1 = arith.constant 0 : i32
    return %c0_i32, %c0_i32_0 : i32, i32
  }
  func.func @transform_3(%arg0: i32) -> (i32, i32) {
    %c0_i32 = arith.constant 0 : i32
    %c0_i32_0 = arith.constant 0 : i32
    %c0_i32_1 = arith.constant 0 : i32
    return %c0_i32, %c0_i32_0 : i32, i32
  }
  func.func @transform_4(%arg0: i32) -> (i32, i32) {
    %c0_i32 = arith.constant 0 : i32
    %c0_i32_0 = arith.constant 0 : i32
    return %c0_i32, %arg0 : i32, i32
  }
}

</mosaic_0001>

<bundles_post_ra>
// kernel: _cluster_attention_device.3
= control target key start
LH: loop header
LB: loop body
LE: loop exit
PB: predicated region body
PF: predicated region fallthrough
CT: control target
= control target key end

     0   :  { %v34_v0 = vlaneseq  ;;  %v338_v1 = vmov 0   ;;  %v339_v2 = vmov 1966171168   ;;  %s397_s0 = inlined_call_operand.vmem [shape: s32[8,128], index: 0, kind: input, shape index: {}]   ;;  %s398_s1 = inlined_call_operand.vmem [shape: f32[8,128], index: 1, kind: input, shape index: {}]   ;;  %s399_s2 = inlined_call_operand.vmem [shape: f32[8,1], index: 2, kind: input, shape index: {}]   ;;  %s400_s3 = inlined_call_operand.vmem [shape: f32[8,1], index: 3, kind: input, shape index: {}]   ;;  %s401_s4 = inlined_call_operand.hbm [shape: f32[8,128], index: 4, kind: output, shape index: {}]  }
   0x1   :  { %310 = vset.pattern.permute.xlu0 %v338_v1  ;;  %v32_v3 = vunpack.c.l.s4 %v339_v2  ;;  %311 = vset.pattern.permute.xlu1 %v338_v1 }
   0x2   :  { %9 = vsyncpa [#allocation3], 0  ;;  %v28_v4 = vld [vmem:[%s399_s2] sm:$0xff]  ;;  %v35_v5 = vshrl.u32 %v34_v0, 7 }
   0x3   :  { %v33_v6 = vunpack.c.0.s8 %v32_v3  ;;  %v30_v7 = vcombine.high %v28_v4, %v28_v4  ;;  %v158_v18 = vld [vmem:[%s400_s3] sm:$0xff] }
   0x4   :  { %v81_v10 = vsub.s32 0, %v35_v5  ;;  %v160_v31 = vcombine.high %v158_v18, %v158_v18  ;;  %v19_v52 = vld [vmem:[%s397_s0] sm:$0xff] }
   0x5   :  { %v36_v8 = vsub.s32 %v33_v6, %v35_v5  ;;  %vm20_vm0 = vcmp.eq.s32.totalorder %v19_v52, 0  ;;  %vm21_vm1 = vcmp.eq.s32.totalorder %v19_v52, 1  ;;  %vm22_vm2 = vcmp.eq.s32.totalorder %v19_v52, 2 }
   0x6   :  { %vm23_vm3 = vcmp.eq.s32.totalorder %v19_v52, 3  ;;  %vm24_vm4 = vcmp.eq.s32.totalorder %v19_v52, 4  ;;  %vm25_vm5 = vcmp.eq.s32.totalorder %v19_v52, 5  ;;  %vm26_vm6 = vcmp.eq.s32.totalorder %v19_v52, 6 }
   0x7   :  { %v37_v9 = vrot.slane %v28_v4, %v36_v8  ;;  %v44_v11 = vrot.slane %v30_v7, %v36_v8  ;;  %v167_v25 = vrot.slane %v158_v18, %v36_v8  ;;  %v174_v36 = vrot.slane %v160_v31, %v36_v8 }
   0x8   :  { %vm27_vm7 = vcmp.eq.s32.totalorder %v19_v52, 7 }
   0x9   :  { %v53_v12 = vrot.slane %v37_v9, %v36_v8  ;;  %v45_v13 = vcombine.high %v37_v9, %v37_v9  ;;  %v46_v17 = vcombine.high %v44_v11, %v44_v11  ;;  %v60_v22 = vrot.slane %v44_v11, %v36_v8  ;;  %v18_v11 = vld [vmem:[%s398_s1] sm:$0xff]  ;;  %s340_s1 = smov [#allocation2]  }
   0xa   :  { %v175_v30 = vcombine.high %v167_v25, %v167_v25  ;;  %v183_v33 = vrot.slane %v167_v25, %v36_v8  ;;  %v176_v41 = vcombine.high %v174_v36, %v174_v36  ;;  %v190_v43 = vrot.slane %v174_v36, %v36_v8  ;;  %s299_s20 = sshll.u32 %s340_s1, 4  ;;  %s300_s20 = int_to_ptr.vmem [resolvable:$true] %s299_s20 }
   0xb   :  { %v82_v14 = vrot.slane %v53_v12, %v81_v10  ;;  %v75_v15 = vcombine.high %v53_v12, %v53_v12  ;;  %v67_v16 = vrot.slane %v45_v13, %v36_v8  ;;  %v74_v24 = vrot.slane %v46_v17, %v36_v8  ;;  %s316_s21 = scalar_lea.vmem %s300_s20, 128  ;;  %p321_p1 = scmp.lt.s32.totalorder %s300_s20, %s300_s20 }
   0xc   :  { %v98_v26 = vrot.slane %v60_v22, %v81_v10  ;;  %v76_v27 = vcombine.high %v60_v22, %v60_v22  ;;  %v197_v35 = vrot.slane %v175_v30, %v36_v8  ;;  %v212_v37 = vrot.slane %v183_v33, %v81_v10  ;;  %p317_p0 = scmp.ne.s32.totalorder %s300_s20, %s316_s21  ;;  %p322_p2 = scmp.lt.s32.totalorder %s316_s21, %s316_s21 }
   0xd   :  { %112 = vperm.xlu0 %310, %v82_v14   ;;  %v90_v19 = vrot.slane %v75_v15, %v81_v10  ;;  %v86_v20 = vrot.slane %v67_v16, %v81_v10  ;;  %v77_v21 = vcombine.high %v67_v16, %v67_v16  ;;  %v102_v28 = vrot.slane %v74_v24, %v81_v10 }
   0xe   :  { %v78_v29 = vcombine.high %v74_v24, %v74_v24  ;;  %v106_v32 = vrot.slane %v76_v27, %v81_v10  ;;  %v205_v38 = vcombine.high %v183_v33, %v183_v33  ;;  %v216_v39 = vrot.slane %v197_v35, %v81_v10  ;;  %p323_p3 = por %p322_p2, %p321_p1 }
   0xf   :  { %120 = vperm.xlu1 %311, %v90_v19   ;;  %v94_v23 = vrot.slane %v77_v21, %v81_v10  ;;  %v207_v40 = vcombine.high %v197_v35, %v197_v35  ;;  %v204_v45 = vrot.slane %v176_v41, %v36_v8  ;;  %v228_v46 = vrot.slane %v190_v43, %v81_v10 }
  0x10   :  { %v110_v34 = vrot.slane %v78_v29, %v81_v10  ;;  %v220_v42 = vrot.slane %v205_v38, %v81_v10  ;;  %v206_v47 = vcombine.high %v190_v43, %v190_v43  ;;  %p324_p4 = pnand %p323_p3, %p317_p0 }
  0x11   :  { %116 = vperm.xlu0 %310, %v86_v20   ;;  %v224_v44 = vrot.slane %v207_v40, %v81_v10  ;;  %v232_v48 = vrot.slane %v204_v45, %v81_v10  ;;  %v208_v49 = vcombine.high %v204_v45, %v204_v45 }
  0x12   :  { %v236_v50 = vrot.slane %v206_v47, %v81_v10 }
  0x13   :  { %124 = vperm.xlu1 %311, %v94_v23   ;;  %v240_v51 = vrot.slane %v208_v49, %v81_v10 }
  0x15   :  { %128 = vperm.xlu0 %310, %v98_v26  }
  0x17   :  { %132 = vperm.xlu1 %311, %v102_v28  }
  0x19   :  { %136 = vperm.xlu0 %310, %v106_v32  }
  0x1b   :  { %140 = vperm.xlu1 %311, %v110_v34  }
  0x1d   :  { %242 = vperm.xlu0 %310, %v212_v37  }
  0x1f   :  { %246 = vperm.xlu1 %311, %v216_v39  }
  0x21   :  { %250 = vperm.xlu0 %310, %v220_v42  }
  0x23   :  { %254 = vperm.xlu1 %311, %v224_v44  }
  0x25   :  { %258 = vperm.xlu0 %310, %v228_v46  }
  0x27   :  { %262 = vperm.xlu1 %311, %v232_v48  }
  0x29   :  { %266 = vperm.xlu0 %310, %v236_v50  }
  0x2b   :  { %270 = vperm.xlu1 %311, %v240_v51  }
  0x88   :  { %v113_v53 = vpop.permute.xlu0 %112 }
  0x89   :  { %v143_v56 = vsel %vm20_vm0, %v113_v53, 0.0 }
  0x8a   :  { %v121_v54 = vpop.permute.xlu1 %120 }
  0x8b   :  { %v145_v60 = vsel %vm22_vm2, %v121_v54, 0.0 }
  0x8c   :  { %v117_v55 = vpop.permute.xlu0 %116 }
  0x8d   :  { %v144_v57 = vsel %vm21_vm1, %v117_v55, 0.0 }
  0x8e   :  { %v151_v58 = vadd.f32 %v144_v57, %v143_v56  ;;  %v125_v59 = vpop.permute.xlu1 %124 }
  0x8f   :  { %v146_v63 = vsel %vm23_vm3, %v125_v59, 0.0 }
  0x90   :  { %v152_v61 = vadd.f32 %v151_v58, %v145_v60  ;;  %v129_v62 = vpop.permute.xlu0 %128 }
  0x91   :  { %v147_v2 = vsel %vm24_vm4, %v129_v62, 0.0 }
  0x92   :  { %v153_v0 = vadd.f32 %v152_v61, %v146_v63  ;;  %v133_v1 = vpop.permute.xlu1 %132 }
  0x93   :  { %v148_v5 = vsel %vm25_vm5, %v133_v1, 0.0 }
  0x94   :  { %v154_v3 = vadd.f32 %v153_v0, %v147_v2  ;;  %v137_v4 = vpop.permute.xlu0 %136 }
  0x95   :  { %v149_v8 = vsel %vm26_vm6, %v137_v4, 0.0 }
  0x96   :  { %v155_v6 = vadd.f32 %v154_v3, %v148_v5  ;;  %v141_v7 = vpop.permute.xlu1 %140 }
  0x97   :  { %v150_v12 = vsel %vm27_vm7, %v141_v7, 0.0 }
  0x98   :  { %v156_v9 = vadd.f32 %v155_v6, %v149_v8  ;;  %v243_v10 = vpop.permute.xlu0 %242 }
  0x99   :  { %v273_v15 = vsel %vm20_vm0, %v243_v10, 0.0 }
  0x9a   :  { %v157_v13 = vadd.f32 %v156_v9, %v150_v12  ;;  %v247_v14 = vpop.permute.xlu1 %246 }
  0x9b   :  { %v274_v16 = vsel %vm21_vm1, %v247_v14, 0.0 }
  0x9c   :  { %v288_v17 = vsub.f32 %v18_v11, %v157_v13  ;;  %v281_v18 = vadd.f32 %v274_v16, %v273_v15  ;;  %v251_v19 = vpop.permute.xlu0 %250 }
  0x9d   :  { %v275_v20 = vsel %vm22_vm2, %v251_v19, 0.0 }
  0x9e   :  { %v289_v21 = vmul.f32 1.442695, %v288_v17  ;;  %v282_v22 = vadd.f32 %v281_v18, %v275_v20  ;;  %v255_v23 = vpop.permute.xlu1 %254 }
  0x9f   :  { %v276_v24 = vsel %vm23_vm3, %v255_v23, 0.0 }
  0xa0   :  { %314 = vpow2.f32 %v289_v21  ;;  %v283_v25 = vadd.f32 %v282_v22, %v276_v24  ;;  %v259_v26 = vpop.permute.xlu0 %258 }
  0xa1   :  { %v277_v27 = vsel %vm24_vm4, %v259_v26, 0.0 }
  0xa2   :  { %v284_v28 = vadd.f32 %v283_v25, %v277_v27  ;;  %v263_v29 = vpop.permute.xlu1 %262 }
  0xa3   :  { %v278_v30 = vsel %vm25_vm5, %v263_v29, 0.0 }
  0xa4   :  { %v285_v31 = vadd.f32 %v284_v28, %v278_v30  ;;  %v267_v32 = vpop.permute.xlu0 %266 }
  0xa5   :  { %v279_v33 = vsel %vm26_vm6, %v267_v32, 0.0 }
  0xa6   :  { %v271_v34 = vpop.permute.xlu1 %270  ;;  %v286_v35 = vadd.f32 %v285_v31, %v279_v33 }
  0xa7   :  { %v280_v36 = vsel %vm27_vm7, %v271_v34, 0.0 }
  0xa8   :  { %v287_v37 = vadd.f32 %v286_v35, %v280_v36 }
  0xad   :  { %v315_v38 = vpop.eup %314 }
  0xae   :  { %v291_v39 = vmul.f32 %v315_v38, %v287_v37 }
  0xb0   :  { %292 = vst [vmem:[#allocation2] sm:$0xff] %v291_v39 }
  0xb1   :  { %327 = shalt.err (!%p324_p4)
}
  0xb2   :  { %302 = dma.vmem_to_hbm [thread:$0]  %s300_s20, 128, %s401_s4, [#allocation3]  }
  0xb3   :  { %336 = dma.done.wait [#allocation3], 128  }
  0xb4   :  { %337 = vsyncadd [#allocation3], 4294967168 }
  0xb5   :  { %306 = vsyncpa [#allocation3], 1 }

// kernel: _cluster_attention_device.2
= control target key start
LH: loop header
LB: loop body
LE: loop exit
PB: predicated region body
PF: predicated region fallthrough
CT: control target
= control target key end

     0   :  { %15 = vsyncpa [#allocation4], 0  ;;  %s1192_s27 = smov [#allocation3]   ;;  %s1716_s0 = inlined_call_operand.vmem [shape: s32[8,128], index: 0, kind: input, shape index: {}]   ;;  %s1717_s1 = inlined_call_operand.vmem [shape: bf16[256,128], index: 1, kind: input, shape index: {}]   ;;  %s1718_s2 = inlined_call_operand.hbm [shape: f32[256,256], index: 2, kind: input, shape index: {}]   ;;  %s1719_s3 = inlined_call_operand.vmem [shape: f32[256,1], index: 3, kind: input, shape index: {}]   ;;  %s1720_s4 = inlined_call_operand.vmem [shape: f32[8,256], index: 4, kind: input, shape index: {}]   ;;  %s1721_s5 = inlined_call_operand.<no memory space> [shape: f32[1,1], index: 5, kind: input, shape index: {}]   ;;  %s1722_s6 = inlined_call_operand.vmem [shape: f32[8,128], index: 6, kind: output, shape index: {0}]   ;;  %s1723_s7 = inlined_call_operand.vmem [shape: f32[1,8,1], index: 7, kind: output, shape index: {1}]   ;;  %s1724_s8 = inlined_call_operand.vmem [shape: f32[1,8,1], index: 8, kind: output, shape index: {2}]  }
   0x1   :  { %s25_s28 = sshll.u32 %s1192_s27, 4  ;;  %s26_s28 = int_to_ptr.vmem [resolvable:$true] %s25_s28 }
   0x2   :  { %s1178_s29 = scalar_lea.vmem %s26_s28, 8192  ;;  %p1183_p1 = scmp.lt.s32.totalorder %s26_s28, %s26_s28 }
   0x3   :  { %p1179_p0 = scmp.ne.s32.totalorder %s26_s28, %s1178_s29  ;;  %p1184_p2 = scmp.lt.s32.totalorder %s1178_s29, %s1178_s29 }
   0x5   :  { %p1185_p3 = por %p1184_p2, %p1183_p1 }
   0x7   :  { %p1186_p4 = pnand %p1185_p3, %p1179_p0 }
   0x9   :  { %1189 = shalt.err (!%p1186_p4)
}
   0xa   :  { %s1193_s30 = smov 256   ;;  %s1194_s9 = smov 16  }
   0xb   :  { %31 = dma.hbm_to_vmem [thread:$0]  %s1718_s2, 8192, %s26_s28, [#allocation4], %s1193_s30, %s1193_s30, %s1194_s9  }
   0xc   :  { %1190 = dma.done.wait [#allocation4], 8192  }
   0xd   :  { %1191 = vsyncadd [#allocation4], 4294959104  ;;  %v1195_v0 = vmov 0.0   ;;  %v1196_v1 = vmov 0   ;;  %v1053_v2 = vld [vmem:[%s1717_s1 + $0x38] sm:$0xff]   ;;  %v1052_v3 = vld [vmem:[%s1717_s1 + $0x30] sm:$0xff]  }
   0xe   :  { %361 = vmatprep.subr.mxu0 %v1195_v0  ;;  %1097 = vmatprep.subr.mxu1 %v1195_v0  ;;  %v1013_v4 = vunpack.c.l.bf16 %v1053_v2  ;;  %v1014_v5 = vunpack.c.h.bf16 %v1053_v2  ;;  %v1010_v6 = vunpack.c.h.bf16 %v1052_v3  ;;  %v1051_v7 = vld [vmem:[%s1717_s1 + $0x28] sm:$0xff]   ;;  %v1009_v8 = vunpack.c.l.bf16 %v1052_v3  ;;  %v1050_v10 = vld [vmem:[%s1717_s1 + $0x20] sm:$0xff]   ;;  %v1049_v13 = vld [vmem:[%s1717_s1 + $0x18] sm:$0xff]  }
   0xf   :  { %1167 = vset.pattern.permute.xlu1 %v1196_v1  ;;  %1166 = vset.pattern.permute.xlu0 %v1196_v1  ;;  %v1006_v9 = vunpack.c.h.bf16 %v1051_v7  ;;  %v1005_v11 = vunpack.c.l.bf16 %v1051_v7  ;;  %v1002_v12 = vunpack.c.h.bf16 %v1050_v10  ;;  %v1001_v14 = vunpack.c.l.bf16 %v1050_v10  ;;  %v1048_v16 = vld [vmem:[%s1717_s1 + $0x10] sm:$0xff]   ;;  %v1047_v19 = vld [vmem:[%s1717_s1 + $0x8] sm:$0xff]   ;;  %v984_v22 = vld [vmem:[%s1717_s1] sm:$0xff]  }
  0x10   :  { %362 = vmatpush1.msra.mxu0 %v1014_v5  ;;  %1129 = vmatpush1.msra.mxu1 %v1014_v5  ;;  %v998_v15 = vunpack.c.h.bf16 %v1049_v13  ;;  %v997_v17 = vunpack.c.l.bf16 %v1049_v13  ;;  %v994_v18 = vunpack.c.h.bf16 %v1048_v16  ;;  %v993_v20 = vunpack.c.l.bf16 %v1048_v16  ;;  %v1061_v25 = vld [vmem:[%s1717_s1 + $0x78] sm:$0xff]   ;;  %v1060_v28 = vld [vmem:[%s1717_s1 + $0x70] sm:$0xff]   ;;  %v1059_v31 = vld [vmem:[%s1717_s1 + $0x68] sm:$0xff]  }
  0x11   :  { %363 = vmatprep.subr.mxu0 %v1195_v0  ;;  %1098 = vmatprep.subr.mxu1 %v1195_v0  ;;  %v990_v21 = vunpack.c.h.bf16 %v1047_v19  ;;  %v989_v23 = vunpack.c.l.bf16 %v1047_v19  ;;  %v986_v24 = vunpack.c.h.bf16 %v984_v22  ;;  %v985_v26 = vunpack.c.l.bf16 %v984_v22  ;;  %v1058_v34 = vld [vmem:[%s1717_s1 + $0x60] sm:$0xff]   ;;  %v1057_v37 = vld [vmem:[%s1717_s1 + $0x58] sm:$0xff]   ;;  %v1056_v40 = vld [vmem:[%s1717_s1 + $0x50] sm:$0xff]  }
  0x12   :  { %364 = vmatpush1.msra.mxu0 %v1013_v4  ;;  %1130 = vmatpush1.msra.mxu1 %v1013_v4  ;;  %v1046_v27 = vunpack.c.h.bf16 %v1061_v25  ;;  %v1045_v29 = vunpack.c.l.bf16 %v1061_v25  ;;  %v1042_v30 = vunpack.c.h.bf16 %v1060_v28  ;;  %v1041_v32 = vunpack.c.l.bf16 %v1060_v28  ;;  %v1055_v43 = vld [vmem:[%s1717_s1 + $0x48] sm:$0xff]   ;;  %v1054_v46 = vld [vmem:[%s1717_s1 + $0x40] sm:$0xff]   ;;  %v140_v51 = vld [vmem:[#allocation3 + $0x118] sm:$0xff] }
  0x13   :  { %365 = vmatprep.subr.mxu0 %v1195_v0  ;;  %1099 = vmatprep.subr.mxu1 %v1195_v0  ;;  %v1038_v33 = vunpack.c.h.bf16 %v1059_v31  ;;  %v1037_v35 = vunpack.c.l.bf16 %v1059_v31  ;;  %v1034_v36 = vunpack.c.h.bf16 %v1058_v34  ;;  %v1033_v38 = vunpack.c.l.bf16 %v1058_v34  ;;  %v106_v50 = vld [vmem:[#allocation3 + $0x8] sm:$0xff]  ;;  %v105_v52 = vld [vmem:[#allocation3] sm:$0xff]  ;;  %v139_v53 = vld [vmem:[#allocation3 + $0x110] sm:$0xff] }
  0x14   :  { %366 = vmatpush1.msra.mxu0 %v1010_v6  ;;  %1131 = vmatpush1.msra.mxu1 %v1010_v6  ;;  %v1030_v39 = vunpack.c.h.bf16 %v1057_v37  ;;  %v1029_v41 = vunpack.c.l.bf16 %v1057_v37  ;;  %v1026_v42 = vunpack.c.h.bf16 %v1056_v40  ;;  %v1025_v44 = vunpack.c.l.bf16 %v1056_v40  ;;  %v108_v54 = vld [vmem:[#allocation3 + $0x18] sm:$0xff]  ;;  %v142_v55 = vld [vmem:[#allocation3 + $0x128] sm:$0xff]  ;;  %v199_v56 = vld [vmem:[%s1719_s3 + $0xf0] sm:$0xff] }
  0x15   :  { %367 = vmatprep.subr.mxu0 %v1195_v0  ;;  %1100 = vmatprep.subr.mxu1 %v1195_v0  ;;  %v1022_v45 = vunpack.c.h.bf16 %v1055_v43  ;;  %v1021_v47 = vunpack.c.l.bf16 %v1055_v43  ;;  %v1018_v48 = vunpack.c.h.bf16 %v1054_v46  ;;  %v1017_v49 = vunpack.c.l.bf16 %v1054_v46  ;;  %v200_v57 = vld [vmem:[%s1719_s3 + $0xf8] sm:$0xff]  ;;  %v107_v58 = vld [vmem:[#allocation3 + $0x10] sm:$0xff]  ;;  %v141_v59 = vld [vmem:[#allocation3 + $0x120] sm:$0xff] }
  0x16   :  { %368 = vmatpush1.msra.mxu0 %v1009_v8  ;;  %1132 = vmatpush1.msra.mxu1 %v1009_v8  ;;  %v110_v60 = vld [vmem:[#allocation3 + $0x28] sm:$0xff]  ;;  %v144_v61 = vld [vmem:[#allocation3 + $0x138] sm:$0xff]  ;;  %v183_v62 = vld [vmem:[%s1719_s3 + $0x70] sm:$0xff] }
  0x17   :  { %369 = vmatprep.subr.mxu0 %v1195_v0  ;;  %1101 = vmatprep.subr.mxu1 %v1195_v0  ;;  %v184_v63 = vld [vmem:[%s1719_s3 + $0x78] sm:$0xff]  ;;  %v143_v1 = vld [vmem:[#allocation3 + $0x130] sm:$0xff]  ;;  %v146_v3 = vld [vmem:[#allocation3 + $0x148] sm:$0xff] }
  0x18   :  { %370 = vmatpush1.msra.mxu0 %v1006_v9  ;;  %1133 = vmatpush1.msra.mxu1 %v1006_v9  ;;  %v112_v2 = vld [vmem:[#allocation3 + $0x38] sm:$0xff]  ;;  %v182_v4 = vld [vmem:[%s1719_s3 + $0x68] sm:$0xff]  ;;  %v111_v6 = vld [vmem:[#allocation3 + $0x30] sm:$0xff] }
  0x19   :  { %371 = vmatprep.subr.mxu0 %v1195_v0  ;;  %1102 = vmatprep.subr.mxu1 %v1195_v0  ;;  %v198_v5 = vld [vmem:[%s1719_s3 + $0xe8] sm:$0xff]  ;;  %v145_v7 = vld [vmem:[#allocation3 + $0x140] sm:$0xff]  ;;  %v148_v9 = vld [vmem:[#allocation3 + $0x158] sm:$0xff] }
  0x1a   :  { %372 = vmatpush1.msra.mxu0 %v1005_v11  ;;  %1134 = vmatpush1.msra.mxu1 %v1005_v11  ;;  %v114_v8 = vld [vmem:[#allocation3 + $0x48] sm:$0xff]  ;;  %v181_v10 = vld [vmem:[%s1719_s3 + $0x60] sm:$0xff]  ;;  %v147_v13 = vld [vmem:[#allocation3 + $0x150] sm:$0xff] }
  0x1b   :  { %373 = vmatprep.subr.mxu0 %v1195_v0  ;;  %1103 = vmatprep.subr.mxu1 %v1195_v0  ;;  %v197_v11 = vld [vmem:[%s1719_s3 + $0xe0] sm:$0xff]  ;;  %v180_v16 = vld [vmem:[%s1719_s3 + $0x58] sm:$0xff]  ;;  %v179_v22 = vld [vmem:[%s1719_s3 + $0x50] sm:$0xff] }
  0x1c   :  { %374 = vmatpush1.msra.mxu0 %v1002_v12  ;;  %1135 = vmatpush1.msra.mxu1 %v1002_v12  ;;  %v113_v12 = vld [vmem:[#allocation3 + $0x40] sm:$0xff]  ;;  %v151_v25 = vld [vmem:[#allocation3 + $0x170] sm:$0xff]  ;;  %v178_v28 = vld [vmem:[%s1719_s3 + $0x48] sm:$0xff] }
  0x1d   :  { %375 = vmatprep.subr.mxu0 %v1195_v0  ;;  %1104 = vmatprep.subr.mxu1 %v1195_v0  ;;  %v149_v19 = vld [vmem:[#allocation3 + $0x160] sm:$0xff]  ;;  %v155_v37 = vld [vmem:[#allocation3 + $0x190] sm:$0xff]  ;;  %v176_v40 = vld [vmem:[%s1719_s3 + $0x38] sm:$0xff] }
  0x1e   :  { %376 = vmatpush1.msra.mxu0 %v1001_v14  ;;  %1136 = vmatpush1.msra.mxu1 %v1001_v14  ;;  %v116_v14 = vld [vmem:[#allocation3 + $0x58] sm:$0xff]  ;;  %v153_v31 = vld [vmem:[#allocation3 + $0x180] sm:$0xff]  ;;  %v175_v46 = vld [vmem:[%s1719_s3 + $0x30] sm:$0xff] }
  0x1f   :  { %377 = vmatprep.subr.mxu0 %v1195_v0  ;;  %1105 = vmatprep.subr.mxu1 %v1195_v0  ;;  %v177_v34 = vld [vmem:[%s1719_s3 + $0x40] sm:$0xff] }
  0x20   :  { %378 = vmatpush1.msra.mxu0 %v998_v15  ;;  %1137 = vmatpush1.msra.mxu1 %v998_v15  ;;  %v150_v15 = vld [vmem:[#allocation3 + $0x168] sm:$0xff]  ;;  %v157_v43 = vld [vmem:[#allocation3 + $0x1a0] sm:$0xff] }
  0x21   :  { %379 = vmatprep.subr.mxu0 %v1195_v0  ;;  %1106 = vmatprep.subr.mxu1 %v1195_v0 }
  0x22   :  { %380 = vmatpush1.msra.mxu0 %v997_v17  ;;  %1138 = vmatpush1.msra.mxu1 %v997_v17  ;;  %v196_v17 = vld [vmem:[%s1719_s3 + $0xd8] sm:$0xff] }
  0x23   :  { %381 = vmatprep.subr.mxu0 %v1195_v0  ;;  %1107 = vmatprep.subr.mxu1 %v1195_v0 }
  0x24   :  { %382 = vmatpush1.msra.mxu0 %v994_v18  ;;  %1139 = vmatpush1.msra.mxu1 %v994_v18  ;;  %v115_v18 = vld [vmem:[#allocation3 + $0x50] sm:$0xff] }
  0x25   :  { %383 = vmatprep.subr.mxu0 %v1195_v0  ;;  %1108 = vmatprep.subr.mxu1 %v1195_v0 }
  0x26   :  { %384 = vmatpush1.msra.mxu0 %v993_v20  ;;  %1140 = vmatpush1.msra.mxu1 %v993_v20  ;;  %v118_v20 = vld [vmem:[#allocation3 + $0x68] sm:$0xff] }
  0x27   :  { %385 = vmatprep.subr.mxu0 %v1195_v0  ;;  %1109 = vmatprep.subr.mxu1 %v1195_v0 }
  0x28   :  { %386 = vmatpush1.msra.mxu0 %v990_v21  ;;  %1141 = vmatpush1.msra.mxu1 %v990_v21  ;;  %v152_v21 = vld [vmem:[#allocation3 + $0x178] sm:$0xff] }
  0x29   :  { %387 = vmatprep.subr.mxu0 %v1195_v0  ;;  %1110 = vmatprep.subr.mxu1 %v1195_v0 }
  0x2a   :  { %388 = vmatpush1.msra.mxu0 %v989_v23  ;;  %1142 = vmatpush1.msra.mxu1 %v989_v23  ;;  %v195_v23 = vld [vmem:[%s1719_s3 + $0xd0] sm:$0xff] }
  0x2b   :  { %389 = vmatprep.subr.mxu0 %v1195_v0  ;;  %1111 = vmatprep.subr.mxu1 %v1195_v0 }
  0x2c   :  { %390 = vmatpush1.msra.mxu0 %v986_v24  ;;  %1143 = vmatpush1.msra.mxu1 %v986_v24  ;;  %v117_v24 = vld [vmem:[#allocation3 + $0x60] sm:$0xff] }
  0x2d   :  { %391 = vmatprep.subr.mxu0 %v1195_v0  ;;  %1112 = vmatprep.subr.mxu1 %v1195_v0 }
  0x2e   :  { %392 = vmatpush1.msra.mxu0 %v985_v26  ;;  %1144 = vmatpush1.msra.mxu1 %v985_v26  ;;  %v120_v26 = vld [vmem:[#allocation3 + $0x78] sm:$0xff] }
  0x2f   :  { %393 = vmatprep.subr.mxu0 %v1195_v0  ;;  %1113 = vmatprep.subr.mxu1 %v1195_v0 }
  0x30   :  { %394 = vmatpush2.msra.mxu0 %v1046_v27  ;;  %1145 = vmatpush2.msra.mxu1 %v1046_v27  ;;  %v154_v27 = vld [vmem:[#allocation3 + $0x188] sm:$0xff] }
  0x31   :  { %395 = vmatprep.subr.mxu0 %v1195_v0  ;;  %1114 = vmatprep.subr.mxu1 %v1195_v0 }
  0x32   :  { %396 = vmatpush2.msra.mxu0 %v1045_v29  ;;  %1146 = vmatpush2.msra.mxu1 %v1045_v29  ;;  %v194_v29 = vld [vmem:[%s1719_s3 + $0xc8] sm:$0xff] }
  0x33   :  { %397 = vmatprep.subr.mxu0 %v1195_v0  ;;  %1115 = vmatprep.subr.mxu1 %v1195_v0 }
  0x34   :  { %398 = vmatpush2.msra.mxu0 %v1042_v30  ;;  %1147 = vmatpush2.msra.mxu1 %v1042_v30  ;;  %v119_v30 = vld [vmem:[#allocation3 + $0x70] sm:$0xff] }
  0x35   :  { %399 = vmatprep.subr.mxu0 %v1195_v0  ;;  %1116 = vmatprep.subr.mxu1 %v1195_v0 }
  0x36   :  { %400 = vmatpush2.msra.mxu0 %v1041_v32  ;;  %1148 = vmatpush2.msra.mxu1 %v1041_v32  ;;  %v122_v32 = vld [vmem:[#allocation3 + $0x88] sm:$0xff] }
  0x37   :  { %401 = vmatprep.subr.mxu0 %v1195_v0  ;;  %1117 = vmatprep.subr.mxu1 %v1195_v0 }
  0x38   :  { %402 = vmatpush2.msra.mxu0 %v1038_v33  ;;  %1149 = vmatpush2.msra.mxu1 %v1038_v33  ;;  %v156_v33 = vld [vmem:[#allocation3 + $0x198] sm:$0xff] }
  0x39   :  { %403 = vmatprep.subr.mxu0 %v1195_v0  ;;  %1118 = vmatprep.subr.mxu1 %v1195_v0 }
  0x3a   :  { %404 = vmatpush2.msra.mxu0 %v1037_v35  ;;  %1150 = vmatpush2.msra.mxu1 %v1037_v35  ;;  %v193_v35 = vld [vmem:[%s1719_s3 + $0xc0] sm:$0xff] }
  0x3b   :  { %405 = vmatprep.subr.mxu0 %v1195_v0  ;;  %1119 = vmatprep.subr.mxu1 %v1195_v0 }
  0x3c   :  { %406 = vmatpush2.msra.mxu0 %v1034_v36  ;;  %1151 = vmatpush2.msra.mxu1 %v1034_v36  ;;  %v121_v36 = vld [vmem:[#allocation3 + $0x80] sm:$0xff] }
  0x3d   :  { %407 = vmatprep.subr.mxu0 %v1195_v0  ;;  %1120 = vmatprep.subr.mxu1 %v1195_v0 }
  0x3e   :  { %408 = vmatpush2.msra.mxu0 %v1033_v38  ;;  %1152 = vmatpush2.msra.mxu1 %v1033_v38  ;;  %v124_v38 = vld [vmem:[#allocation3 + $0x98] sm:$0xff] }
  0x3f   :  { %409 = vmatprep.subr.mxu0 %v1195_v0  ;;  %1121 = vmatprep.subr.mxu1 %v1195_v0 }
  0x40   :  { %410 = vmatpush2.msra.mxu0 %v1030_v39  ;;  %1153 = vmatpush2.msra.mxu1 %v1030_v39  ;;  %v158_v39 = vld [vmem:[#allocation3 + $0x1a8] sm:$0xff] }
  0x41   :  { %411 = vmatprep.subr.mxu0 %v1195_v0  ;;  %1122 = vmatprep.subr.mxu1 %v1195_v0 }
  0x42   :  { %412 = vmatpush2.msra.mxu0 %v1029_v41  ;;  %1154 = vmatpush2.msra.mxu1 %v1029_v41  ;;  %v192_v41 = vld [vmem:[%s1719_s3 + $0xb8] sm:$0xff] }
  0x43   :  { %413 = vmatprep.subr.mxu0 %v1195_v0  ;;  %1123 = vmatprep.subr.mxu1 %v1195_v0 }
  0x44   :  { %414 = vmatpush2.msra.mxu0 %v1026_v42  ;;  %1155 = vmatpush2.msra.mxu1 %v1026_v42  ;;  %v123_v42 = vld [vmem:[#allocation3 + $0x90] sm:$0xff] }
  0x45   :  { %415 = vmatprep.subr.mxu0 %v1195_v0  ;;  %1124 = vmatprep.subr.mxu1 %v1195_v0 }
  0x46   :  { %416 = vmatpush2.msra.mxu0 %v1025_v44  ;;  %1156 = vmatpush2.msra.mxu1 %v1025_v44  ;;  %v126_v44 = vld [vmem:[#allocation3 + $0xa8] sm:$0xff] }
  0x47   :  { %417 = vmatprep.subr.mxu0 %v1195_v0  ;;  %1125 = vmatprep.subr.mxu1 %v1195_v0 }
  0x48   :  { %418 = vmatpush2.msra.mxu0 %v1022_v45  ;;  %1157 = vmatpush2.msra.mxu1 %v1022_v45  ;;  %v160_v45 = vld [vmem:[#allocation3 + $0x1b8] sm:$0xff] }
  0x49   :  { %419 = vmatprep.subr.mxu0 %v1195_v0  ;;  %1126 = vmatprep.subr.mxu1 %v1195_v0 }
  0x4a   :  { %420 = vmatpush2.msra.mxu0 %v1021_v47  ;;  %1158 = vmatpush2.msra.mxu1 %v1021_v47  ;;  %v191_v47 = vld [vmem:[%s1719_s3 + $0xb0] sm:$0xff] }
  0x4b   :  { %421 = vmatprep.subr.mxu0 %v1195_v0  ;;  %1127 = vmatprep.subr.mxu1 %v1195_v0 }
  0x4c   :  { %422 = vmatpush2.msra.mxu0 %v1018_v48  ;;  %1159 = vmatpush2.msra.mxu1 %v1018_v48  ;;  %v125_v48 = vld [vmem:[#allocation3 + $0xa0] sm:$0xff] }
  0x4d   :  { %423 = vmatprep.subr.mxu0 %v1195_v0  ;;  %1128 = vmatprep.subr.mxu1 %v1195_v0  ;;  %v109_v0 = vld [vmem:[#allocation3 + $0x20] sm:$0xff] }
  0x4e   :  { %424 = vmatpush2.msra.mxu0 %v1017_v49  ;;  %1160 = vmatpush2.msra.mxu1 %v1017_v49  ;;  %v159_v49 = vld [vmem:[#allocation3 + $0x1b0] sm:$0xff] }
  0x4f   :  { %425 = vmatprep.mubr.f32.mxu0 %v106_v50  ;;  %510 = vmatprep.mubr.f32.mxu1 %v140_v51  ;;  %v128_v50 = vld [vmem:[#allocation3 + $0xb8] sm:$0xff]  ;;  %v162_v51 = vld [vmem:[#allocation3 + $0x1c8] sm:$0xff] }
  0x50   :  { %426 = vmatmul.mubr.f32.vlgmr.msra.gmra.mxu0 %v105_v52  ;;  %511 = vmatmul.mubr.f32.vlgmr.msra.gmra.mxu1 %v139_v53  ;;  %v174_v52 = vld [vmem:[%s1719_s3 + $0x28] sm:$0xff] }
  0x51   :  { %430 = vmatprep.mubr.f32.mxu0 %v108_v54  ;;  %515 = vmatprep.mubr.f32.mxu1 %v142_v55  ;;  %v190_v53 = vld [vmem:[%s1719_s3 + $0xa8] sm:$0xff]  ;;  %v127_v54 = vld [vmem:[#allocation3 + $0xb0] sm:$0xff]  ;;  %v161_v55 = vld [vmem:[#allocation3 + $0x1c0] sm:$0xff] }
  0x52   :  { %353 = vperm.xlu1 %1167, %v199_v56   ;;  %358 = vperm.xlu0 %1166, %v200_v57   ;;  %v130_v56 = vld [vmem:[#allocation3 + $0xc8] sm:$0xff]  ;;  %v164_v57 = vld [vmem:[#allocation3 + $0x1d8] sm:$0xff] }
  0x54   :  { %431 = vmatmul.mubr.f32.gmra.mxu0 %v107_v58  ;;  %516 = vmatmul.mubr.f32.gmra.mxu1 %v141_v59  ;;  %v173_v58 = vld [vmem:[%s1719_s3 + $0x20] sm:$0xff] }
  0x55   :  { %435 = vmatprep.mubr.f32.mxu0 %v110_v60  ;;  %520 = vmatprep.mubr.f32.mxu1 %v144_v61  ;;  %v189_v59 = vld [vmem:[%s1719_s3 + $0xa0] sm:$0xff]  ;;  %v163_v61 = vld [vmem:[#allocation3 + $0x1d0] sm:$0xff] }
  0x56   :  { %273 = vperm.xlu1 %1167, %v183_v62   ;;  %278 = vperm.xlu0 %1166, %v184_v63   ;;  %v129_v60 = vld [vmem:[#allocation3 + $0xc0] sm:$0xff]  ;;  %v132_v62 = vld [vmem:[#allocation3 + $0xd8] sm:$0xff]  ;;  %v166_v63 = vld [vmem:[#allocation3 + $0x1e8] sm:$0xff] }
  0x58   :  { %436 = vmatmul.mubr.f32.gmra.mxu0 %v109_v0  ;;  %521 = vmatmul.mubr.f32.gmra.mxu1 %v143_v1  ;;  %v172_v0 = vld [vmem:[%s1719_s3 + $0x18] sm:$0xff] }
  0x59   :  { %440 = vmatprep.mubr.f32.mxu0 %v112_v2  ;;  %525 = vmatprep.mubr.f32.mxu1 %v146_v3  ;;  %v188_v1 = vld [vmem:[%s1719_s3 + $0x98] sm:$0xff]  ;;  %v131_v2 = vld [vmem:[#allocation3 + $0xd0] sm:$0xff]  ;;  %v165_v3 = vld [vmem:[#allocation3 + $0x1e0] sm:$0xff] }
  0x5a   :  { %268 = vperm.xlu1 %1167, %v182_v4   ;;  %348 = vperm.xlu0 %1166, %v198_v5   ;;  %v134_v4 = vld [vmem:[#allocation3 + $0xe8] sm:$0xff]  ;;  %v168_v5 = vld [vmem:[#allocation3 + $0x1f8] sm:$0xff] }
  0x5c   :  { %441 = vmatmul.mubr.f32.gmra.mxu0 %v111_v6  ;;  %526 = vmatmul.mubr.f32.gmra.mxu1 %v145_v7  ;;  %v171_v6 = vld [vmem:[%s1719_s3 + $0x10] sm:$0xff] }
  0x5d   :  { %445 = vmatprep.mubr.f32.mxu0 %v114_v8  ;;  %530 = vmatprep.mubr.f32.mxu1 %v148_v9  ;;  %v187_v7 = vld [vmem:[%s1719_s3 + $0x90] sm:$0xff]  ;;  %v133_v8 = vld [vmem:[#allocation3 + $0xe0] sm:$0xff] }
  0x5e   :  { %263 = vperm.xlu1 %1167, %v181_v10   ;;  %343 = vperm.xlu0 %1166, %v197_v11   ;;  %v167_v9 = vld [vmem:[#allocation3 + $0x1f0] sm:$0xff]  ;;  %v136_v10 = vld [vmem:[#allocation3 + $0xf8] sm:$0xff]  ;;  %v170_v11 = vld [vmem:[%s1719_s3 + $0x8] sm:$0xff] }
  0x60   :  { %446 = vmatmul.mubr.f32.gmra.mxu0 %v113_v12  ;;  %531 = vmatmul.mubr.f32.gmra.mxu1 %v147_v13  ;;  %v186_v12 = vld [vmem:[%s1719_s3 + $0x88] sm:$0xff]  ;;  %v135_v13 = vld [vmem:[#allocation3 + $0xf0] sm:$0xff] }
  0x61   :  { %450 = vmatprep.mubr.f32.mxu0 %v116_v14  ;;  %535 = vmatprep.mubr.f32.mxu1 %v150_v15  ;;  %v138_v14 = vld [vmem:[#allocation3 + $0x108] sm:$0xff]  ;;  %v169_v15 = vld [vmem:[%s1719_s3] sm:$0xff] }
  0x62   :  { %258 = vperm.xlu1 %1167, %v180_v16   ;;  %338 = vperm.xlu0 %1166, %v196_v17   ;;  %v185_v16 = vld [vmem:[%s1719_s3 + $0x80] sm:$0xff] }
  0x63   :  { %v137_v17 = vld [vmem:[#allocation3 + $0x100] sm:$0xff] }
  0x64   :  { %451 = vmatmul.mubr.f32.gmra.mxu0 %v115_v18  ;;  %536 = vmatmul.mubr.f32.gmra.mxu1 %v149_v19  ;;  %v683_v18 = vld [vmem:[%s1720_s4 + $0x8] sm:$0xff] }
  0x65   :  { %455 = vmatprep.mubr.f32.mxu0 %v118_v20  ;;  %540 = vmatprep.mubr.f32.mxu1 %v152_v21 }
  0x66   :  { %253 = vperm.xlu1 %1167, %v179_v22   ;;  %333 = vperm.xlu0 %1166, %v195_v23  }
  0x68   :  { %456 = vmatmul.mubr.f32.gmra.mxu0 %v117_v24  ;;  %541 = vmatmul.mubr.f32.gmra.mxu1 %v151_v25 }
  0x69   :  { %460 = vmatprep.mubr.f32.mxu0 %v120_v26  ;;  %545 = vmatprep.mubr.f32.mxu1 %v154_v27 }
  0x6a   :  { %248 = vperm.xlu1 %1167, %v178_v28   ;;  %328 = vperm.xlu0 %1166, %v194_v29  }
  0x6c   :  { %461 = vmatmul.mubr.f32.gmra.mxu0 %v119_v30  ;;  %546 = vmatmul.mubr.f32.gmra.mxu1 %v153_v31 }
  0x6d   :  { %465 = vmatprep.mubr.f32.mxu0 %v122_v32  ;;  %550 = vmatprep.mubr.f32.mxu1 %v156_v33 }
  0x6e   :  { %243 = vperm.xlu1 %1167, %v177_v34   ;;  %323 = vperm.xlu0 %1166, %v193_v35  }
  0x70   :  { %466 = vmatmul.mubr.f32.gmra.mxu0 %v121_v36  ;;  %551 = vmatmul.mubr.f32.gmra.mxu1 %v155_v37 }
  0x71   :  { %470 = vmatprep.mubr.f32.mxu0 %v124_v38  ;;  %555 = vmatprep.mubr.f32.mxu1 %v158_v39 }
  0x72   :  { %238 = vperm.xlu1 %1167, %v176_v40   ;;  %318 = vperm.xlu0 %1166, %v192_v41  }
  0x74   :  { %471 = vmatmul.mubr.f32.gmra.mxu0 %v123_v42  ;;  %556 = vmatmul.mubr.f32.gmra.mxu1 %v157_v43 }
  0x75   :  { %475 = vmatprep.mubr.f32.mxu0 %v126_v44  ;;  %560 = vmatprep.mubr.f32.mxu1 %v160_v45 }
  0x76   :  { %233 = vperm.xlu1 %1167, %v175_v46   ;;  %313 = vperm.xlu0 %1166, %v191_v47  }
  0x78   :  { %476 = vmatmul.mubr.f32.gmra.mxu0 %v125_v48  ;;  %561 = vmatmul.mubr.f32.gmra.mxu1 %v159_v49 }
  0x79   :  { %480 = vmatprep.mubr.f32.mxu0 %v128_v50  ;;  %565 = vmatprep.mubr.f32.mxu1 %v162_v51 }
  0x7a   :  { %228 = vperm.xlu1 %1167, %v174_v52   ;;  %308 = vperm.xlu0 %1166, %v190_v53  }
  0x7c   :  { %481 = vmatmul.mubr.f32.gmra.mxu0 %v127_v54  ;;  %566 = vmatmul.mubr.f32.gmra.mxu1 %v161_v55 }
  0x7d   :  { %485 = vmatprep.mubr.f32.mxu0 %v130_v56  ;;  %570 = vmatprep.mubr.f32.mxu1 %v164_v57 }
  0x7e   :  { %223 = vperm.xlu1 %1167, %v173_v58   ;;  %303 = vperm.xlu0 %1166, %v189_v59  }
  0x80   :  { %486 = vmatmul.mubr.f32.gmra.mxu0 %v129_v60  ;;  %571 = vmatmul.mubr.f32.gmra.mxu1 %v163_v61 }
  0x81   :  { %490 = vmatprep.mubr.f32.mxu0 %v132_v62  ;;  %575 = vmatprep.mubr.f32.mxu1 %v166_v63 }
  0x82   :  { %218 = vperm.xlu1 %1167, %v172_v0   ;;  %298 = vperm.xlu0 %1166, %v188_v1  }
  0x84   :  { %491 = vmatmul.mubr.f32.gmra.mxu0 %v131_v2  ;;  %576 = vmatmul.mubr.f32.gmra.mxu1 %v165_v3 }
  0x85   :  { %495 = vmatprep.mubr.f32.mxu0 %v134_v4  ;;  %580 = vmatprep.mubr.f32.mxu1 %v168_v5 }
  0x86   :  { %213 = vperm.xlu1 %1167, %v171_v6   ;;  %293 = vperm.xlu0 %1166, %v187_v7  }
  0x88   :  { %496 = vmatmul.mubr.f32.gmra.mxu0 %v133_v8  ;;  %581 = vmatmul.mubr.f32.gmra.mxu1 %v167_v9 }
  0x89   :  { %500 = vmatprep.mubr.f32.mxu0 %v136_v10  ;;  %750 = vmatprep.mubr.f32.mxu1 %v683_v18 }
  0x8a   :  { %208 = vperm.xlu1 %1167, %v170_v11   ;;  %288 = vperm.xlu0 %1166, %v186_v12  }
  0x8c   :  { %501 = vmatmul.mubr.f32.gmra.mxu0 %v135_v13 }
  0x8d   :  { %505 = vmatprep.mubr.f32.mxu0 %v138_v14 }
  0x8e   :  { %203 = vperm.xlu1 %1167, %v169_v15   ;;  %283 = vperm.xlu0 %1166, %v185_v16  }
  0x90   :  { %506 = vmatmul.mubr.f32.gmra.mxu0 %v137_v17 }
  0xcd   :  { %v1456_v19 = vpop.permute.xlu1 %353  ;;  %v1458_v20 = vpop.permute.xlu0 %358 }
  0xd1   :  { %v1460_v21 = vpop.permute.xlu1 %273  ;;  %v1466_v26 = vpop.permute.xlu0 %278 }
  0xd5   :  { %v1472_v29 = vpop.permute.xlu1 %268  ;;  %v1478_v34 = vpop.permute.xlu0 %348 }
  0xd9   :  { %v1480_v37 = vpop.permute.xlu1 %263  ;;  %v1486_v42 = vpop.permute.xlu0 %343 }
  0xdd   :  { %v1492_v45 = vpop.permute.xlu1 %258  ;;  %v1498_v50 = vpop.permute.xlu0 %338 }
  0xe1   :  { %v1500_v53 = vpop.permute.xlu1 %253  ;;  %v1506_v58 = vpop.permute.xlu0 %333 }
  0xe5   :  { %v1512_v61 = vpop.permute.xlu1 %248  ;;  %v1518_v2 = vpop.permute.xlu0 %328 }
  0xe9   :  { %v1520_v5 = vpop.permute.xlu1 %243  ;;  %v1524_v10 = vpop.permute.xlu0 %323 }
  0xed   :  { %v1526_v13 = vpop.permute.xlu1 %238  ;;  %v1528_v18 = vpop.permute.xlu0 %318 }
 0x110   :  { %v1462_v22 = vpop.f32.mrf.mxu0  ;;  %v1464_v23 = vpop.f32.mrf.mxu1 }
 0x112   :  { %v429_v24 = vpop.f32.mrf.mxu0  ;;  %v514_v25 = vpop.f32.mrf.mxu1 }
 0x114   :  { %v1468_v27 = vpop.f32.mrf.mxu0  ;;  %v1470_v28 = vpop.f32.mrf.mxu1 }
 0x116   :  { %v434_v30 = vpop.f32.mrf.mxu0  ;;  %v519_v31 = vpop.f32.mrf.mxu1 }
 0x117   :  { %v1530_v30 = vpop.permute.xlu1 %233 }
 0x118   :  { %v1474_v32 = vpop.f32.mrf.mxu0  ;;  %v1476_v33 = vpop.f32.mrf.mxu1 }
 0x11a   :  { %v439_v35 = vpop.f32.mrf.mxu0  ;;  %v524_v36 = vpop.f32.mrf.mxu1 }
 0x11c   :  { %v1482_v38 = vpop.f32.mrf.mxu0  ;;  %v1484_v39 = vpop.f32.mrf.mxu1 }
 0x11e   :  { %v444_v40 = vpop.f32.mrf.mxu0  ;;  %v529_v41 = vpop.f32.mrf.mxu1 }
 0x11f   :  { %v1532_v41 = vpop.permute.xlu0 %313 }
 0x120   :  { %v1488_v43 = vpop.f32.mrf.mxu0  ;;  %v1490_v44 = vpop.f32.mrf.mxu1 }
 0x122   :  { %v449_v46 = vpop.f32.mrf.mxu0  ;;  %v534_v47 = vpop.f32.mrf.mxu1 }
 0x124   :  { %v1494_v48 = vpop.f32.mrf.mxu0  ;;  %v1496_v49 = vpop.f32.mrf.mxu1 }
 0x126   :  { %v454_v51 = vpop.f32.mrf.mxu0  ;;  %v539_v52 = vpop.f32.mrf.mxu1 }
 0x127   :  { %v1534_v51 = vpop.permute.xlu1 %228 }
 0x128   :  { %v1502_v54 = vpop.f32.mrf.mxu0  ;;  %v1504_v55 = vpop.f32.mrf.mxu1 }
 0x12a   :  { %v459_v56 = vpop.f32.mrf.mxu0  ;;  %v544_v57 = vpop.f32.mrf.mxu1 }
 0x12c   :  { %v1508_v59 = vpop.f32.mrf.mxu0  ;;  %v1510_v60 = vpop.f32.mrf.mxu1 }
 0x12e   :  { %v464_v62 = vpop.f32.mrf.mxu0  ;;  %v549_v63 = vpop.f32.mrf.mxu1 }
 0x12f   :  { %v1536_v63 = vpop.permute.xlu0 %308 }
 0x130   :  { %v1514_v0 = vpop.f32.mrf.mxu0  ;;  %v1516_v1 = vpop.f32.mrf.mxu1 }
 0x132   :  { %v469_v3 = vpop.f32.mrf.mxu0  ;;  %v554_v4 = vpop.f32.mrf.mxu1 }
 0x134   :  { %v1522_v6 = vpop.f32.mrf.mxu0  ;;  %v557_v7 = vpop.f32.mrf.mxu1 }
 0x136   :  { %v474_v8 = vpop.f32.mrf.mxu0  ;;  %v559_v9 = vpop.f32.mrf.mxu1 }
 0x138   :  { %v477_v11 = vpop.f32.mrf.mxu0  ;;  %v562_v12 = vpop.f32.mrf.mxu1 }
 0x13a   :  { %v479_v14 = vpop.f32.mrf.mxu0  ;;  %v564_v15 = vpop.f32.mrf.mxu1 }
 0x13c   :  { %v482_v16 = vpop.f32.mrf.mxu0  ;;  %v567_v17 = vpop.f32.mrf.mxu1 }
 0x13e   :  { %v484_v24 = vpop.f32.mrf.mxu0  ;;  %v569_v25 = vpop.f32.mrf.mxu1 }
 0x13f   :  { %v1541_v24 = vpop.permute.xlu1 %223 }
 0x140   :  { %v487_v31 = vpop.f32.mrf.mxu0  ;;  %v572_v35 = vpop.f32.mrf.mxu1 }
 0x141   :  { %v573_v25 = vadd.f32 %v572_v35, %v1478_v34  ;;  %v563_v34 = vadd.f32 %v562_v12, %v1498_v50  ;;  %v478_v50 = vadd.f32 %v477_v11, %v1500_v53  ;;  %v548_v11 = vadd.f32 %v1510_v60, %v1524_v10 }
 0x142   :  { %v489_v36 = vpop.f32.mrf.mxu0  ;;  %v574_v40 = vpop.f32.mrf.mxu1  ;;  %v463_v10 = vadd.f32 %v1508_v59, %v1526_v13  ;;  %v533_v13 = vadd.f32 %v1490_v44, %v1536_v63  ;;  %v448_v63 = vadd.f32 %v1488_v43, %v1541_v24 }
 0x143   :  { %v647_v35 = vmul.f32 0.45, %v573_v25  ;;  %vm615_vm4 = vcmp.ge.f32.partialorder %v573_v25, 0.0  ;;  %vm613_vm8 = vcmp.ge.f32.partialorder %v563_v34, 0.0  ;;  %vm596_vm11 = vcmp.ge.f32.partialorder %v478_v50, 0.0 }
 0x144   :  { %v492_v46 = vpop.f32.mrf.mxu0  ;;  %v577_v47 = vpop.f32.mrf.mxu1  ;;  %vm610_vm14 = vcmp.ge.f32.partialorder %v548_v11, 0.0 }
 0x145   :  { %v578_v4 = vadd.f32 %v577_v47, %v1456_v19  ;;  %v493_v40 = vadd.f32 %v492_v46, %v1472_v29  ;;  %v488_v19 = vadd.f32 %v487_v31, %v1480_v37  ;;  %v1554_v37 = vpop.permute.xlu1 %218  ;;  %v558_v31 = vadd.f32 %v557_v7, %v1506_v58 }
 0x146   :  { %v494_v52 = vpop.f32.mrf.mxu0  ;;  %v579_v56 = vpop.f32.mrf.mxu1  ;;  %v679_v58 = vsel %vm615_vm4, %v573_v25, %v647_v35  ;;  %v628_v25 = vmul.f32 0.45, %v478_v50  ;;  %vm607_vm4 = vcmp.ge.f32.partialorder %v533_v13, 0.0 }
 0x147   :  { %v648_v47 = vmul.f32 0.45, %v578_v4  ;;  %vm616_vm2 = vcmp.ge.f32.partialorder %v578_v4, 0.0  ;;  %vm599_vm5 = vcmp.ge.f32.partialorder %v493_v40, 0.0  ;;  %v630_v12 = vmul.f32 0.45, %v488_v19 }
 0x148   :  { %v497_v57 = vpop.f32.mrf.mxu0  ;;  %v582_v62 = vpop.f32.mrf.mxu1  ;;  %vm598_vm7 = vcmp.ge.f32.partialorder %v488_v19, 0.0  ;;  %vm612_vm10 = vcmp.ge.f32.partialorder %v558_v31, 0.0  ;;  %v660_v59 = vsel %vm596_vm11, %v478_v50, %v628_v25 }
 0x149   :  { %v583_v3 = vadd.f32 %v582_v62, %v1458_v20  ;;  %v498_v14 = vadd.f32 %v497_v57, %v1460_v21  ;;  %v568_v20 = vadd.f32 %v567_v17, %v1486_v42  ;;  %v1548_v21 = vpop.permute.xlu0 %303  ;;  %v631_v42 = vmul.f32 0.45, %v493_v40 }
 0x14a   :  { %v499_v8 = vpop.f32.mrf.mxu0  ;;  %v584_v9 = vpop.f32.mrf.mxu1 }
 0x14b   :  { %v649_v15 = vmul.f32 0.45, %v583_v3  ;;  %vm617_vm0 = vcmp.ge.f32.partialorder %v583_v3, 0.0  ;;  %v632_v57 = vmul.f32 0.45, %v498_v14  ;;  %vm600_vm3 = vcmp.ge.f32.partialorder %v498_v14, 0.0 }
 0x14c   :  { %v502_v36 = vpop.f32.mrf.mxu0  ;;  %v646_v46 = vmul.f32 0.45, %v568_v20  ;;  %vm614_vm6 = vcmp.ge.f32.partialorder %v568_v20, 0.0  ;;  %v663_v53 = vsel %vm599_vm5, %v493_v40, %v631_v42  ;;  %v543_v40 = vadd.f32 %v1504_v55, %v1528_v18 }
 0x14d   :  { %v503_v52 = vadd.f32 %v502_v36, %v1466_v26  ;;  %v681_v56 = vsel %vm617_vm0, %v583_v3, %v649_v15  ;;  %v483_v26 = vadd.f32 %v482_v16, %v1492_v45  ;;  %v680_v3 = vsel %vm616_vm2, %v578_v4, %v648_v47  ;;  %v299_v7 = vpop.permute.xlu0 %298 }
 0x14e   :  { %v504_v62 = vpop.f32.mrf.mxu0  ;;  %1062 = vmatprep.subr.mxu1 %v681_v56  ;;  %v664_v15 = vsel %vm600_vm3, %v498_v14, %v632_v57  ;;  %v553_v45 = vadd.f32 %v1516_v1, %v1518_v2  ;;  %v645_v16 = vmul.f32 0.45, %v563_v34  ;;  %v473_v4 = vadd.f32 %v1522_v6, %v1512_v61  ;;  %v214_v6 = vpop.permute.xlu1 %213 }
 0x14f   :  { %vm601_vm1 = vcmp.ge.f32.partialorder %v503_v52, 0.0  ;;  %v633_v8 = vmul.f32 0.45, %v503_v52  ;;  %v629_v36 = vmul.f32 0.45, %v483_v26  ;;  %vm597_vm9 = vcmp.ge.f32.partialorder %v483_v26, 0.0 }
 0x150   :  { %v1551_v29 = vpop.f32.mrf.mxu0  ;;  %v644_v14 = vmul.f32 0.45, %v558_v31  ;;  %v678_v1 = vsel %vm614_vm6, %v568_v20, %v646_v46  ;;  %v468_v2 = vadd.f32 %v1514_v0, %v1520_v5  ;;  %v662_v61 = vsel %vm598_vm7, %v488_v19, %v630_v12 }
 0x151   :  { %v665_v17 = vsel %vm601_vm1, %v503_v52, %v633_v8  ;;  %v643_v52 = vmul.f32 0.45, %v553_v45  ;;  %v677_v60 = vsel %vm613_vm8, %v563_v34, %v645_v16  ;;  %v627_v56 = vmul.f32 0.45, %v473_v4  ;;  %v294_v18 = vpop.permute.xlu0 %293 }
 0x152   :  { %1063 = vmatpush3.msra.mxu1 %v665_v17  ;;  %v509_v9 = vpop.f32.mrf.mxu0  ;;  %v661_v0 = vsel %vm597_vm9, %v483_v26, %v629_v36  ;;  %vm611_vm12 = vcmp.ge.f32.partialorder %v553_v45, 0.0  ;;  %v538_v5 = vadd.f32 %v1496_v49, %v1532_v41  ;;  %v642_v20 = vmul.f32 0.45, %v548_v11 }
 0x153   :  { %1064 = vmatprep.subr.mxu1 %v680_v3  ;;  %vm595_vm13 = vcmp.ge.f32.partialorder %v473_v4, 0.0  ;;  %v676_v55 = vsel %vm612_vm10, %v558_v31, %v644_v14  ;;  %v458_v19 = vadd.f32 %v1502_v54, %v1530_v30  ;;  %v626_v47 = vmul.f32 0.45, %v468_v2  ;;  %v209_v30 = vpop.permute.xlu1 %208 }
 0x154   :  { %1065 = vmatpush3.msra.mxu1 %v664_v15  ;;  %v641_v62 = vmul.f32 0.45, %v543_v40  ;;  %vm594_vm15 = vcmp.ge.f32.partialorder %v468_v2, 0.0  ;;  %v675_v49 = vsel %vm611_vm12, %v553_v45, %v643_v52  ;;  %v453_v41 = vadd.f32 %v1494_v48, %v1534_v51 }
 0x155   :  { %1066 = vmatprep.subr.mxu1 %v679_v58  ;;  %v625_v57 = vmul.f32 0.45, %v463_v10  ;;  %v659_v54 = vsel %vm595_vm13, %v473_v4, %v627_v56  ;;  %vm609_vm0 = vcmp.ge.f32.partialorder %v543_v40, 0.0  ;;  %v528_v8 = vadd.f32 %v1484_v39, %v1548_v21  ;;  %v289_v21 = vpop.permute.xlu0 %288 }
 0x156   :  { %1067 = vmatpush3.msra.mxu1 %v663_v53  ;;  %v640_v34 = vmul.f32 0.45, %v538_v5  ;;  %vm593_vm1 = vcmp.ge.f32.partialorder %v463_v10, 0.0  ;;  %v674_v44 = vsel %vm610_vm14, %v548_v11, %v642_v20  ;;  %v624_v35 = vmul.f32 0.45, %v458_v19 }
 0x157   :  { %1068 = vmatprep.subr.mxu1 %v678_v1  ;;  %v658_v48 = vsel %vm594_vm15, %v468_v2, %v626_v47  ;;  %vm608_vm2 = vcmp.ge.f32.partialorder %v538_v5, 0.0  ;;  %v523_v51 = vadd.f32 %v1476_v33, %v299_v7  ;;  %v639_v26 = vmul.f32 0.45, %v533_v13 }
 0x158   :  { %1069 = vmatpush3.msra.mxu1 %v662_v61  ;;  %vm592_vm3 = vcmp.ge.f32.partialorder %v458_v19, 0.0  ;;  %v673_v39 = vsel %vm609_vm0, %v543_v40, %v641_v62  ;;  %v443_v42 = vadd.f32 %v1482_v38, %v1554_v37  ;;  %v623_v17 = vmul.f32 0.45, %v453_v41  ;;  %v204_v38 = vpop.permute.xlu1 %203  ;;  %v682_v40 = vld [vmem:[%s1720_s4] sm:$0xff] }
 0x159   :  { %1070 = vmatprep.subr.mxu1 %v677_v60  ;;  %v657_v43 = vsel %vm593_vm1, %v463_v10, %v625_v57  ;;  %v518_v24 = vadd.f32 %v1470_v28, %v294_v18  ;;  %v638_v31 = vmul.f32 0.45, %v528_v8  ;;  %vm591_vm5 = vcmp.ge.f32.partialorder %v453_v41, 0.0  ;;  %v284_v45 = vpop.permute.xlu0 %283  ;;  %v1618_v10 = vld [vmem:[%s1716_s0] sm:$0xff] }
 0x15a   :  { %1071 = vmatpush3.msra.mxu1 %v661_v0  ;;  %v672_v33 = vsel %vm608_vm2, %v538_v5, %v640_v34  ;;  %v438_v46 = vadd.f32 %v1474_v32, %v214_v6  ;;  %v622_v3 = vmul.f32 0.45, %v448_v63  ;;  %v656_v9 = vsel %vm592_vm3, %v458_v19, %v624_v35 }
 0x15b   :  { %1072 = vmatprep.subr.mxu1 %v676_v55  ;;  %vm606_vm6 = vcmp.ge.f32.partialorder %v528_v8, 0.0  ;;  %v513_v37 = vadd.f32 %v1464_v23, %v289_v21  ;;  %v637_v50 = vmul.f32 0.45, %v523_v51  ;;  %vm590_vm7 = vcmp.ge.f32.partialorder %v448_v63, 0.0 }
 0x15c   :  { %1073 = vmatpush3.msra.mxu1 %v660_v59  ;;  %v671_v28 = vsel %vm607_vm4, %v533_v13, %v639_v26  ;;  %v433_v12 = vadd.f32 %v1468_v27, %v209_v30  ;;  %v621_v15 = vmul.f32 0.45, %v443_v42  ;;  %v655_v32 = vsel %vm591_vm5, %v453_v41, %v623_v17 }
 0x15d   :  { %1074 = vmatprep.subr.mxu1 %v675_v49  ;;  %vm605_vm8 = vcmp.ge.f32.partialorder %v523_v51, 0.0  ;;  %v636_v16 = vmul.f32 0.45, %v518_v24  ;;  %vm589_vm9 = vcmp.ge.f32.partialorder %v443_v42, 0.0  ;;  %v508_v58 = vadd.f32 %v1551_v29, %v284_v45 }
 0x15e   :  { %1075 = vmatpush3.msra.mxu1 %v659_v54  ;;  %v670_v23 = vsel %vm606_vm6, %v528_v8, %v638_v31  ;;  %v428_v7 = vadd.f32 %v1462_v22, %v204_v38  ;;  %v620_v4 = vmul.f32 0.45, %v438_v46  ;;  %v654_v36 = vsel %vm590_vm7, %v448_v63, %v622_v3 }
 0x15f   :  { %1076 = vmatprep.subr.mxu1 %v674_v44  ;;  %vm604_vm10 = vcmp.ge.f32.partialorder %v518_v24, 0.0  ;;  %v635_v27 = vmul.f32 0.45, %v513_v37  ;;  %vm588_vm11 = vcmp.ge.f32.partialorder %v438_v46, 0.0  ;;  %v669_v53 = vsel %vm605_vm8, %v523_v51, %v637_v50 }
 0x160   :  { %1077 = vmatpush3.msra.mxu1 %v658_v48  ;;  %v619_v11 = vmul.f32 0.45, %v433_v12  ;;  %v653_v14 = vsel %vm589_vm9, %v443_v42, %v621_v15  ;;  %vm603_vm12 = vcmp.ge.f32.partialorder %v513_v37, 0.0  ;;  %vm587_vm13 = vcmp.ge.f32.partialorder %v433_v12, 0.0 }
 0x161   :  { %1078 = vmatprep.subr.mxu1 %v673_v39  ;;  %v634_v29 = vmul.f32 0.45, %v508_v58  ;;  %v668_v1 = vsel %vm604_vm10, %v518_v24, %v636_v16  ;;  %v618_v2 = vmul.f32 0.45, %v428_v7  ;;  %v652_v22 = vsel %vm588_vm11, %v438_v46, %v620_v4 }
 0x162   :  { %1079 = vmatpush3.msra.mxu1 %v657_v43  ;;  %vm602_vm14 = vcmp.ge.f32.partialorder %v508_v58, 0.0  ;;  %vm586_vm15 = vcmp.ge.f32.partialorder %v428_v7, 0.0  ;;  %v667_v25 = vsel %vm603_vm12, %v513_v37, %v635_v27  ;;  %v651_v61 = vsel %vm587_vm13, %v433_v12, %v619_v11 }
 0x163   :  { %1080 = vmatprep.subr.mxu1 %v672_v33  ;;  %v666_v6 = vsel %vm602_vm14, %v508_v58, %v634_v29  ;;  %v650_v52 = vsel %vm586_vm15, %v428_v7, %v618_v2  ;;  %v685_v56 = vstv %s1721_s5  ;;  %vm758_vm0 = vcmp.eq.s32.totalorder %v1618_v10, 0 }
 0x164   :  { %1081 = vmatpush3.msra.mxu1 %v656_v9  ;;  %vm759_vm1 = vcmp.eq.s32.totalorder %v1618_v10, 1  ;;  %vm760_vm2 = vcmp.eq.s32.totalorder %v1618_v10, 2  ;;  %vm762_vm3 = vcmp.eq.s32.totalorder %v1618_v10, 4  ;;  %vm761_vm4 = vcmp.eq.s32.totalorder %v1618_v10, 3 }
 0x165   :  { %1082 = vmatprep.subr.mxu1 %v671_v28  ;;  %vm764_vm5 = vcmp.eq.s32.totalorder %v1618_v10, 6  ;;  %vm763_vm6 = vcmp.eq.s32.totalorder %v1618_v10, 5  ;;  %vm765_vm7 = vcmp.eq.s32.totalorder %v1618_v10, 7  ;;  %vm936_vm8 = vcmask 1041409  }
 0x166   :  { %1083 = vmatpush3.msra.mxu1 %v655_v32  ;;  %vm938_vm9 = vcmask 1042434   ;;  %vm940_vm10 = vcmask 1043459   ;;  %vm942_vm11 = vcmask 1044484   ;;  %vm944_vm12 = vcmask 1045509  }
 0x167   :  { %1084 = vmatprep.subr.mxu1 %v670_v23  ;;  %vm946_vm13 = vcmask 1046534   ;;  %vm948_vm14 = vcmask 1047559   ;;  %vm951_vm15 = vcmask 7168  }
 0x168   :  { %1085 = vmatpush3.msra.mxu1 %v654_v36 }
 0x169   :  { %1086 = vmatprep.subr.mxu1 %v669_v53 }
 0x16a   :  { %1087 = vmatpush3.msra.mxu1 %v653_v14 }
 0x16b   :  { %1088 = vmatprep.subr.mxu1 %v668_v1 }
 0x16c   :  { %1089 = vmatpush3.msra.mxu1 %v652_v22 }
 0x16d   :  { %1090 = vmatprep.subr.mxu1 %v667_v25 }
 0x16e   :  { %1091 = vmatpush3.msra.mxu1 %v651_v61 }
 0x16f   :  { %1092 = vmatprep.subr.mxu1 %v666_v6 }
 0x170   :  { %1093 = vmatpush3.msra.mxu1 %v650_v52 }
 0x171   :  { %751 = vmatmul.mubr.f32.vlgmr.msra.gmra.mxu1 %v682_v40 }
 0x231   :  { %v1094_v60 = vpop.f32.mrf.mxu1 }
 0x233   :  { %v1095_v0 = vpop.f32.mrf.mxu1 }
 0x234   :  { %v1096_v5 = vadd.f32 %v1095_v0, %v1094_v60 }
 0x236   :  { %v1625_v20 = vadd.f32 %v1096_v5, %v685_v56 }
 0x238   :  { %756 = vst [vmem:[%s1722_s6] sm:$0xff] %v1625_v20  ;;  %v766_v55 = vsel %vm758_vm0, %v1625_v20, -1e+30  ;;  %v767_v18 = vsel %vm759_vm1, %v1625_v20, -1e+30  ;;  %v768_v19 = vsel %vm760_vm2, %v1625_v20, -1e+30 }
 0x239   :  { %774 = vmax.xlane.f32.xlu0 %v766_v55  ;;  %776 = vmax.xlane.f32.xlu1 %v767_v18  ;;  %v770_v47 = vsel %vm762_vm3, %v1625_v20, -1e+30  ;;  %v769_v59 = vsel %vm761_vm4, %v1625_v20, -1e+30  ;;  %v772_v13 = vsel %vm764_vm5, %v1625_v20, -1e+30 }
 0x23a   :  { %v771_v62 = vsel %vm763_vm6, %v1625_v20, -1e+30  ;;  %v773_v49 = vsel %vm765_vm7, %v1625_v20, -1e+30 }
 0x23d   :  { %778 = vmax.xlane.f32.xlu0 %v768_v19  ;;  %782 = vmax.xlane.f32.xlu1 %v770_v47 }
 0x241   :  { %780 = vmax.xlane.f32.xlu0 %v769_v59  ;;  %786 = vmax.xlane.f32.xlu1 %v772_v13 }
 0x245   :  { %784 = vmax.xlane.f32.xlu0 %v771_v62 }
 0x249   :  { %788 = vmax.xlane.f32.xlu0 %v773_v49 }
 0x2c2   :  { %v775_v41 = vpop.xlane.xlu0 %774  ;;  %v777_v57 = vpop.xlane.xlu1 %776 }
 0x2c3   :  { %v790_v54 = vrot.slane %v775_v41, 4  ;;  %v796_v30 = vrot.slane %v777_v57, 4 }
 0x2c5   :  { %v791_v8 = vmax.f32 %v775_v41, %v790_v54  ;;  %v797_v34 = vmax.f32 %v777_v57, %v796_v30 }
 0x2c6   :  { %v779_v44 = vpop.xlane.xlu0 %778  ;;  %v783_v63 = vpop.xlane.xlu1 %782 }
 0x2c7   :  { %v792_v35 = vrot.slane %v791_v8, 2  ;;  %v798_v48 = vrot.slane %v797_v34, 2  ;;  %v802_v51 = vrot.slane %v779_v44, 4  ;;  %v814_v26 = vrot.slane %v783_v63, 4 }
 0x2c9   :  { %v793_v39 = vmax.f32 %v791_v8, %v792_v35  ;;  %v799_v21 = vmax.f32 %v797_v34, %v798_v48  ;;  %v803_v42 = vmax.f32 %v779_v44, %v802_v51  ;;  %v815_v17 = vmax.f32 %v783_v63, %v814_v26 }
 0x2ca   :  { %v781_v43 = vpop.xlane.xlu0 %780  ;;  %v787_v24 = vpop.xlane.xlu1 %786 }
 0x2cb   :  { %v794_v31 = vrot.slane %v793_v39, 1  ;;  %v800_v33 = vrot.slane %v799_v21, 1  ;;  %v804_v46 = vrot.slane %v803_v42, 2  ;;  %v808_v3 = vrot.slane %v781_v43, 4 }
 0x2cc   :  { %v816_v9 = vrot.slane %v815_v17, 2  ;;  %v826_v38 = vrot.slane %v787_v24, 4 }
 0x2cd   :  { %v795_v37 = vmax.f32 %v793_v39, %v794_v31  ;;  %v805_v50 = vmax.f32 %v803_v42, %v804_v46  ;;  %v809_v28 = vmax.f32 %v781_v43, %v808_v3  ;;  %v801_v12 = vmax.f32 %v799_v21, %v800_v33 }
 0x2ce   :  { %v817_v15 = vmax.f32 %v815_v17, %v816_v9  ;;  %v785_v45 = vpop.xlane.xlu0 %784  ;;  %v827_v32 = vmax.f32 %v787_v24, %v826_v38 }
 0x2cf   :  { %v806_v16 = vrot.slane %v805_v50, 1  ;;  %v810_v58 = vrot.slane %v809_v28, 2  ;;  %v820_v23 = vrot.slane %v785_v45, 4  ;;  %v838_v7 = vsel %vm758_vm0, %v795_v37, 0.0 }
 0x2d0   :  { %v828_v36 = vrot.slane %v827_v32, 2  ;;  %v839_v27 = vsel %vm759_vm1, %v801_v12, 0.0  ;;  %v818_v11 = vrot.slane %v817_v15, 1  ;;  %v937_v40 = vsel %vm936_vm8, %v801_v12, %v795_v37 }
 0x2d1   :  { %v807_v4 = vmax.f32 %v805_v50, %v806_v16  ;;  %v811_v53 = vmax.f32 %v809_v28, %v810_v58  ;;  %v821_v14 = vmax.f32 %v785_v45, %v820_v23  ;;  %v846_v6 = vadd.f32 %v839_v27, %v838_v7 }
 0x2d2   :  { %v789_v29 = vpop.xlane.xlu0 %788  ;;  %v829_v1 = vmax.f32 %v827_v32, %v828_v36  ;;  %v819_v56 = vmax.f32 %v817_v15, %v818_v11 }
 0x2d3   :  { %v832_v2 = vrot.slane %v789_v29, 4  ;;  %v840_v22 = vsel %vm760_vm2, %v807_v4, 0.0  ;;  %v812_v25 = vrot.slane %v811_v53, 1  ;;  %v822_v61 = vrot.slane %v821_v14, 2 }
 0x2d4   :  { %v830_v5 = vrot.slane %v829_v1, 1  ;;  %v847_v55 = vadd.f32 %v846_v6, %v840_v22  ;;  %v939_v18 = vsel %vm938_vm9, %v807_v4, %v937_v40  ;;  %v842_v41 = vsel %vm762_vm3, %v819_v56, 0.0 }
 0x2d5   :  { %v833_v52 = vmax.f32 %v789_v29, %v832_v2  ;;  %v813_v60 = vmax.f32 %v811_v53, %v812_v25  ;;  %v823_v0 = vmax.f32 %v821_v14, %v822_v61 }
 0x2d6   :  { %v831_v54 = vmax.f32 %v829_v1, %v830_v5 }
 0x2d7   :  { %v834_v19 = vrot.slane %v833_v52, 2  ;;  %v841_v47 = vsel %vm761_vm4, %v813_v60, 0.0  ;;  %v941_v59 = vsel %vm940_vm10, %v813_v60, %v939_v18  ;;  %v824_v13 = vrot.slane %v823_v0, 1 }
 0x2d8   :  { %v848_v62 = vadd.f32 %v847_v55, %v841_v47  ;;  %v943_v8 = vsel %vm942_vm11, %v819_v56, %v941_v59  ;;  %v844_v51 = vsel %vm764_vm5, %v831_v54, 0.0 }
 0x2d9   :  { %v835_v49 = vmax.f32 %v833_v52, %v834_v19  ;;  %v825_v57 = vmax.f32 %v823_v0, %v824_v13 }
 0x2da   :  { %v849_v30 = vadd.f32 %v848_v62, %v842_v41 }
 0x2db   :  { %v836_v34 = vrot.slane %v835_v49, 1  ;;  %v843_v44 = vsel %vm763_vm6, %v825_v57, 0.0  ;;  %v945_v63 = vsel %vm944_vm12, %v825_v57, %v943_v8 }
 0x2dc   :  { %v850_v35 = vadd.f32 %v849_v30, %v843_v44  ;;  %v947_v26 = vsel %vm946_vm13, %v831_v54, %v945_v63 }
 0x2dd   :  { %v837_v48 = vmax.f32 %v835_v49, %v836_v34 }
 0x2de   :  { %v851_v39 = vadd.f32 %v850_v35, %v844_v51 }
 0x2df   :  { %v845_v21 = vsel %vm765_vm7, %v837_v48, 0.0  ;;  %v949_v42 = vsel %vm948_vm14, %v837_v48, %v947_v26 }
 0x2e0   :  { %952 = vst.msk [vmem:[%s1723_s7] sm:$0xff] %vm951_vm15, %v949_v42  ;;  %v852_v17 = vadd.f32 %v851_v39, %v845_v21 }
 0x2e2   :  { %v853_v43 = vsub.f32 %v1625_v20, %v852_v17 }
 0x2e4   :  { %v854_v24 = vmul.f32 1.442695, %v853_v43 }
 0x2e6   :  { %1168 = vpow2.f32 %v854_v24 }
 0x2f3   :  { %v1169_v31 = vpop.eup %1168 }
 0x2f4   :  { %v857_v33 = vsel %vm759_vm1, %v1169_v31, 0.0  ;;  %v856_v46 = vsel %vm758_vm0, %v1169_v31, 0.0  ;;  %v859_v3 = vsel %vm761_vm4, %v1169_v31, 0.0  ;;  %v858_v9 = vsel %vm760_vm2, %v1169_v31, 0.0 }
 0x2f5   :  { %866 = vadd.xlane.f32.xlu0 %v857_v33  ;;  %864 = vadd.xlane.f32.xlu1 %v856_v46  ;;  %v861_v20 = vsel %vm763_vm6, %v1169_v31, 0.0  ;;  %v860_v38 = vsel %vm762_vm3, %v1169_v31, 0.0  ;;  %v863_v37 = vsel %vm765_vm7, %v1169_v31, 0.0  ;;  %v862_v50 = vsel %vm764_vm5, %v1169_v31, 0.0 }
 0x2f9   :  { %870 = vadd.xlane.f32.xlu0 %v859_v3  ;;  %868 = vadd.xlane.f32.xlu1 %v858_v9 }
 0x2fd   :  { %874 = vadd.xlane.f32.xlu0 %v861_v20  ;;  %872 = vadd.xlane.f32.xlu1 %v860_v38 }
 0x301   :  { %878 = vadd.xlane.f32.xlu0 %v863_v37  ;;  %876 = vadd.xlane.f32.xlu1 %v862_v50 }
 0x37e   :  { %v867_v28 = vpop.xlane.xlu0 %866  ;;  %v865_v12 = vpop.xlane.xlu1 %864 }
 0x37f   :  { %v886_v15 = vrot.slane %v867_v28, 4  ;;  %v880_v45 = vrot.slane %v865_v12, 4 }
 0x381   :  { %v887_v32 = vadd.f32 %v886_v15, %v867_v28  ;;  %v881_v16 = vadd.f32 %v880_v45, %v865_v12 }
 0x382   :  { %v871_v58 = vpop.xlane.xlu0 %870  ;;  %v869_v23 = vpop.xlane.xlu1 %868 }
 0x383   :  { %v888_v7 = vrot.slane %v887_v32, 2  ;;  %v882_v4 = vrot.slane %v881_v16, 2  ;;  %v898_v36 = vrot.slane %v871_v58, 4  ;;  %v892_v27 = vrot.slane %v869_v23, 4 }
 0x385   :  { %v889_v53 = vadd.f32 %v888_v7, %v887_v32  ;;  %v883_v11 = vadd.f32 %v882_v4, %v881_v16  ;;  %v899_v14 = vadd.f32 %v898_v36, %v871_v58  ;;  %v893_v29 = vadd.f32 %v892_v27, %v869_v23 }
 0x386   :  { %v875_v10 = vpop.xlane.xlu0 %874  ;;  %v873_v1 = vpop.xlane.xlu1 %872 }
 0x387   :  { %v890_v2 = vrot.slane %v889_v53, 1  ;;  %v884_v22 = vrot.slane %v883_v11, 1  ;;  %v900_v25 = vrot.slane %v899_v14, 2  ;;  %v894_v61 = vrot.slane %v893_v29, 2 }
 0x388   :  { %v910_v6 = vrot.slane %v875_v10, 4  ;;  %v904_v40 = vrot.slane %v873_v1, 4 }
 0x389   :  { %v901_v52 = vadd.f32 %v900_v25, %v899_v14  ;;  %v895_v60 = vadd.f32 %v894_v61, %v893_v29  ;;  %v891_v56 = vadd.f32 %v890_v2, %v889_v53  ;;  %v885_v19 = vadd.f32 %v884_v22, %v883_v11 }
 0x38a   :  { %v911_v0 = vadd.f32 %v910_v6, %v875_v10  ;;  %v905_v5 = vadd.f32 %v904_v40, %v873_v1  ;;  %v879_v55 = vpop.xlane.xlu0 %878  ;;  %v877_v18 = vpop.xlane.xlu1 %876 }
 0x38b   :  { %v902_v47 = vrot.slane %v901_v52, 1  ;;  %v896_v59 = vrot.slane %v895_v60, 1  ;;  %v922_v13 = vrot.slane %v879_v55, 4  ;;  %v916_v41 = vrot.slane %v877_v18, 4 }
 0x38c   :  { %v912_v62 = vrot.slane %v911_v0, 2  ;;  %v906_v49 = vrot.slane %v905_v5, 2  ;;  %v961_v44 = vsel %vm936_vm8, %v891_v56, %v885_v19 }
 0x38d   :  { %v897_v57 = vadd.f32 %v896_v59, %v895_v60  ;;  %v923_v54 = vadd.f32 %v922_v13, %v879_v55  ;;  %v917_v34 = vadd.f32 %v916_v41, %v877_v18  ;;  %v903_v63 = vadd.f32 %v902_v47, %v901_v52 }
 0x38e   :  { %v913_v30 = vadd.f32 %v912_v62, %v911_v0  ;;  %v907_v8 = vadd.f32 %v906_v49, %v905_v5 }
 0x38f   :  { %v924_v35 = vrot.slane %v923_v54, 2  ;;  %v962_v48 = vsel %vm938_vm9, %v897_v57, %v961_v44  ;;  %v918_v39 = vrot.slane %v917_v34, 2 }
 0x390   :  { %v914_v51 = vrot.slane %v913_v30, 1  ;;  %v908_v26 = vrot.slane %v907_v8, 1  ;;  %v963_v24 = vsel %vm940_vm10, %v903_v63, %v962_v48 }
 0x391   :  { %v925_v21 = vadd.f32 %v924_v35, %v923_v54  ;;  %v919_v17 = vadd.f32 %v918_v39, %v917_v34 }
 0x392   :  { %v909_v42 = vadd.f32 %v908_v26, %v907_v8  ;;  %v915_v43 = vadd.f32 %v914_v51, %v913_v30 }
 0x393   :  { %v926_v31 = vrot.slane %v925_v21, 1  ;;  %v920_v46 = vrot.slane %v919_v17, 1 }
 0x394   :  { %v964_v33 = vsel %vm942_vm11, %v909_v42, %v963_v24 }
 0x395   :  { %v927_v3 = vadd.f32 %v926_v31, %v925_v21  ;;  %v921_v9 = vadd.f32 %v920_v46, %v919_v17  ;;  %v965_v20 = vsel %vm944_vm12, %v915_v43, %v964_v33 }
 0x397   :  { %v966_v38 = vsel %vm946_vm13, %v921_v9, %v965_v20 }
 0x398   :  { %v967_v37 = vsel %vm948_vm14, %v927_v3, %v966_v38 }
 0x399   :  { %969 = vst.msk [vmem:[%s1724_s8] sm:$0xff] %vm951_vm15, %v967_v37 }
 0x39a   :  { %982 = vsyncpa [#allocation4], 1 }

</bundles_post_ra>
